<compile_context>
chip_gen: v7x
topology: tpu7x:2x2x1
jax: 0.10.0
libtpu: 0.0.40
codegen_flags: <defaults>
</compile_context>

<pallas_src>
import functools

import jax
import jax.numpy as jnp
from jax import lax
from jax.experimental import pallas as pl
from jax.experimental.pallas import tpu as pltpu


def _round_up(x, m):
    return (x + m - 1) // m * m


def _rnn_kernel(x_ref, wx_ref, wh_ref, bih_ref, who_ref, bho_ref,
                out_ref, h_scratch, *, num_sub, sub_rows, unroll):
    """One (batch_tile, time_tile) grid step of the tanh-RNN recurrence.

    x_ref    : (Tt, Bt, D)   raw inputs, time-major
    wx_ref   : (D,  Hp)      input->hidden weight (transposed, lane-padded)
    wh_ref   : (Hp, Hp)      hidden->hidden weight (transposed, lane-padded)
    bih_ref  : (1,  Hp)      input->hidden bias   (lane-padded)
    who_ref  : (Hp, Cp)      hidden->output weight (transposed, lane-padded)
    bho_ref  : (1,  Cp)      hidden->output bias  (lane-padded)
    out_ref  : (Bt, Cp)      logits, written on the last time tile only
    h_scratch: (Bt, Hp) VMEM hidden state carried across time tiles
    """
    t_idx = pl.program_id(1)

    @pl.when(t_idx == 0)
    def _init():
        h_scratch[...] = jnp.zeros_like(h_scratch)

    # Grid-invariant operands: loaded once per tile.
    wx = wx_ref[...]
    wh = wh_ref[...]
    bih = bih_ref[...]

    # Hidden state: one VMEM load per time tile, then carried in vregs,
    # split into `num_sub` independent batch sub-tiles for latency hiding.
    hs = [h_scratch[pl.ds(s * sub_rows, sub_rows), :] for s in range(num_sub)]
    t_tile = x_ref.shape[0]

    def one_step(t, hs):
        x_t = x_ref[t]                                     # (Bt, D)
        # Fused input projection (independent of h -> overlaps with recurrence).
        xw = []
        for s in range(num_sub):
            xs = x_t[s * sub_rows:(s + 1) * sub_rows, :]
            xw.append(jnp.dot(xs, wx, preferred_element_type=jnp.float32) + bih)
        # Round-robin the recurrent matmuls across sub-tiles, then the tanhs,
        # so MXU pops / EUP tanh of one sub-tile hide under the next's push.
        pre = [jnp.dot(hs[s], wh, preferred_element_type=jnp.float32) + xw[s]
               for s in range(num_sub)]
        return tuple(jnp.tanh(p) for p in pre)

    if t_tile <= 16:
        # Short fixed trip count: full static unroll (scheduler sees everything).
        for t in range(t_tile):
            hs = list(one_step(t, hs))
    else:
        # Long tiles: bounded unroll keeps vreg pressure / bundle stream sane.
        hs = list(lax.fori_loop(0, t_tile, one_step, tuple(hs), unroll=unroll))

    for s in range(num_sub):
        h_scratch[pl.ds(s * sub_rows, sub_rows), :] = hs[s]

    @pl.when(t_idx == pl.num_programs(1) - 1)
    def _finalize():
        who = who_ref[...]
        bho = bho_ref[...]
        for s in range(num_sub):
            logits = (jnp.dot(hs[s], who, preferred_element_type=jnp.float32)
                      + bho)
            out_ref[pl.ds(s * sub_rows, sub_rows), :] = logits.astype(out_ref.dtype)


def custom_rnn_forward(inputs, w_ih, b_ih, w_ho, b_ho, *,
                       time_tile=None, batch_tile=None, num_sub=2):
    """Forward pass of CustomRNN.  inputs: (B, T, D) float32 -> (B, C) logits."""
    B, T, D = inputs.shape
    H = w_ih.shape[0]
    C = w_ho.shape[0]
    assert w_ih.shape == (H, D + H)

    f32 = jnp.float32
    Hp = _round_up(H, 128)    # lane-dense hidden width
    Cp = _round_up(C, 128)    # lane-dense logits width (sliced back below)

    # Parameter plumbing (pure layout, plain JAX), zero-padded to (Hp, Cp).
    # cat([x_t, h], 1) @ W_ih.T + b_ih  ==  x_t @ Wx + h @ Wh + b_ih
    # Padded lanes stay exactly zero through tanh (0 weights + 0 bias).
    wx = jnp.zeros((D, Hp), f32).at[:, :H].set(jnp.transpose(w_ih[:, :D]).astype(f32))
    wh = jnp.zeros((Hp, Hp), f32).at[:H, :H].set(jnp.transpose(w_ih[:, D:]).astype(f32))
    bih = jnp.zeros((1, Hp), f32).at[0, :H].set(b_ih.astype(f32))
    who = jnp.zeros((Hp, Cp), f32).at[:H, :C].set(jnp.transpose(w_ho).astype(f32))
    bho = jnp.zeros((1, Cp), f32).at[0, :C].set(b_ho.astype(f32))

    # Only the small raw input is made time-major; the (T, B, H) projection is
    # computed inside the kernel and never materialized in HBM.
    x_tm = jnp.transpose(inputs.astype(f32), (1, 0, 2))    # (T, B, D)

    # ---------------- tile selection ----------------
    if batch_tile is None:
        # Target MXU-row-sized tiles (multiple of 8 for f32 sublanes) while
        # keeping >= 2 batch tiles so the "parallel" axis can use both v7x TCs.
        target = min(max(B // 2, 8), 256)
        target -= target % 8
        batch_tile = B
        for bt in range(target, 7, -8):
            if B % bt == 0:
                batch_tile = bt
                break
    assert B % batch_tile == 0, "B must be divisible by batch_tile"
    assert batch_tile % 8 == 0 or batch_tile == B, \
        "batch_tile must be a multiple of 8 (f32 sublanes) or the full batch"

    lane_d = _round_up(D, 128)
    if time_tile is None:
        # Keep the double-buffered x tile around ~4 MiB so it fits v5e's
        # 16 MiB scoped-VMEM default and leaves headroom on v7x's 64 MiB.
        cap = max(1, (4 * 1024 * 1024) // (2 * batch_tile * lane_d * 4))
        time_tile = T if T <= cap else max(
            d for d in range(1, cap + 1) if T % d == 0)
    assert T % time_tile == 0, "T must be divisible by time_tile"

    # Independent batch sub-tiles interleaved inside the time loop.
    while num_sub > 1 and (batch_tile % (num_sub * 8) != 0):
        num_sub -= 1
    sub_rows = batch_tile // num_sub

    grid = (B // batch_tile, T // time_tile)

    # ---------------- explicit VMEM budget ----------------
    est = (
        2 * time_tile * batch_tile * lane_d * 4      # x tile (double-buffered)
        + 2 * _round_up(D, 8) * Hp * 4               # Wx
        + 2 * Hp * Hp * 4                            # Wh
        + 2 * Hp * Cp * 4                            # Who
        + 2 * 8 * (Hp + Cp) * 4                      # biases (sublane-padded)
        + 2 * batch_tile * Cp * 4                    # output (double-buffered)
        + batch_tile * Hp * 4                        # h scratch
    )
    vmem_limit = int(min(64 * 1024 * 1024, max(2 * est, 8 * 1024 * 1024)))

    kernel = functools.partial(_rnn_kernel, num_sub=num_sub,
                               sub_rows=sub_rows, unroll=8)

    out_padded = pl.pallas_call(
        kernel,
        out_shape=jax.ShapeDtypeStruct((B, Cp), f32),
        grid_spec=pltpu.PrefetchScalarGridSpec(
            num_scalar_prefetch=0,
            grid=grid,
            in_specs=[
                # Raw input time tile, time-major so x_ref[t] is one (Bt, D) slab.
                pl.BlockSpec((time_tile, batch_tile, D), lambda b, t: (t, b, 0)),
                # Grid-invariant weights/biases (constant index_map -> single DMA).
                pl.BlockSpec((D, Hp), lambda b, t: (0, 0)),
                pl.BlockSpec((Hp, Hp), lambda b, t: (0, 0)),
                pl.BlockSpec((1, Hp), lambda b, t: (0, 0)),
                pl.BlockSpec((Hp, Cp), lambda b, t: (0, 0)),
                pl.BlockSpec((1, Cp), lambda b, t: (0, 0)),
            ],
            # Accumulator-style output: index_map ignores t; written only on
            # the last time tile (h carried in VMEM scratch in between).
            out_specs=pl.BlockSpec((batch_tile, Cp), lambda b, t: (b, 0)),
            scratch_shapes=[pltpu.VMEM((batch_tile, Hp), f32)],
        ),
        compiler_params=pltpu.CompilerParams(
            dimension_semantics=("parallel", "arbitrary"),
            vmem_limit_bytes=vmem_limit),
    )(x_tm, wx, wh, bih, who, bho)

    return out_padded[:, :C]


def _reference_forward(inputs, w_ih, b_ih, w_ho, b_ho):
    B, T, D = inputs.shape
    H = w_ih.shape[0]
    h = jnp.zeros((B, H), jnp.float32)
    for t in range(T):
        combined = jnp.concatenate([inputs[:, t, :], h], axis=1)
        h = jnp.tanh(combined @ w_ih.T + b_ih)
    return h @ w_ho.T + b_ho


if __name__ == "__main__":
    # Shapes consistent with the module spec (hidden_size=128 is already
    # lane-dense); batch=64 gives grid[0]=2 with the default batch_tile=32.
    batch, seq_len = 64, 8
    input_size, hidden_size, num_classes = 28, 128, 10

    key = jax.random.PRNGKey(0)
    k_x, k_w1, k_b1, k_w2, k_b2 = jax.random.split(key, 5)

    inputs = jax.random.normal(k_x, (batch, seq_len, input_size), jnp.float32)

    fan1 = input_size + hidden_size
    lim1 = 1.0 / jnp.sqrt(fan1)
    w_ih = jax.random.uniform(k_w1, (hidden_size, fan1), jnp.float32, -lim1, lim1)
    b_ih = jax.random.uniform(k_b1, (hidden_size,), jnp.float32, -lim1, lim1)
    lim2 = 1.0 / jnp.sqrt(hidden_size)
    w_ho = jax.random.uniform(k_w2, (num_classes, hidden_size), jnp.float32,
                              -lim2, lim2)
    b_ho = jax.random.uniform(k_b2, (num_classes,), jnp.float32, -lim2, lim2)

    ref = _reference_forward(inputs, w_ih, b_ih, w_ho, b_ho)

    # Default tiling: batch_tile=32 (two batch tiles -> both v7x TCs),
    # one time tile, num_sub=2 interleaved sub-tiles.
    out = jax.block_until_ready(
        custom_rnn_forward(inputs, w_ih, b_ih, w_ho, b_ho))
    assert out.shape == (batch, num_classes)
    assert jnp.allclose(out, ref, atol=1e-3, rtol=1e-3), \
        float(jnp.max(jnp.abs(out - ref)))

    # Exercise time-tiling, batch-tiling and sub-tiling simultaneously
    # (hidden state carried across time tiles in VMEM scratch).
    out_tiled = jax.block_until_ready(
        custom_rnn_forward(inputs, w_ih, b_ih, w_ho, b_ho,
                           time_tile=4, batch_tile=16, num_sub=2))
    assert jnp.allclose(out_tiled, ref, atol=1e-3, rtol=1e-3), \
        float(jnp.max(jnp.abs(out_tiled - ref)))

    print("KERNEL_OK")
</pallas_src>

<mosaic_0001>
module attributes {stable_mosaic.version = 11 : i64} {
  func.func @_rnn_kernel(%arg0: i32, %arg1: i32, %arg2: memref<8x32x28xf32, #tpu.memory_space<vmem>>, %arg3: memref<28x128xf32, #tpu.memory_space<vmem>>, %arg4: memref<128x128xf32, #tpu.memory_space<vmem>>, %arg5: memref<1x128xf32, #tpu.memory_space<vmem>>, %arg6: memref<128x128xf32, #tpu.memory_space<vmem>>, %arg7: memref<1x128xf32, #tpu.memory_space<vmem>>, %arg8: memref<32x128xf32, #tpu.memory_space<vmem>>, %arg9: memref<32x128xf32, #tpu.memory_space<vmem>>) attributes {dimension_semantics = [#tpu.dimension_semantics<parallel>, #tpu.dimension_semantics<arbitrary>], iteration_bounds = array<i64: 2, 1>, scalar_prefetch = 0 : i64, scratch_operands = 1 : i64, tpu.core_type = #tpu.core_type<tc>, window_params = [{transform_indices = @transform_0, window_bounds = array<i64: 8, 32, 28>}, {pipeline_mode = #tpu.pipeline_mode<synchronous>, transform_indices = @transform_1, window_bounds = array<i64: 28, 128>}, {pipeline_mode = #tpu.pipeline_mode<synchronous>, transform_indices = @transform_2, window_bounds = array<i64: 128, 128>}, {pipeline_mode = #tpu.pipeline_mode<synchronous>, transform_indices = @transform_3, window_bounds = array<i64: 1, 128>}, {pipeline_mode = #tpu.pipeline_mode<synchronous>, transform_indices = @transform_4, window_bounds = array<i64: 128, 128>}, {pipeline_mode = #tpu.pipeline_mode<synchronous>, transform_indices = @transform_5, window_bounds = array<i64: 1, 128>}, {transform_indices = @transform_6, window_bounds = array<i64: 32, 128>}]} {
    %c0_i32 = arith.constant 0 : i32
    %0 = arith.cmpi eq, %arg1, %c0_i32 : i32
    %1 = arith.extui %0 : i1 to i32
    %c0_i32_0 = arith.constant 0 : i32
    %2 = arith.cmpi ne, %1, %c0_i32_0 : i32
    scf.if %2 {
      %cst_63 = arith.constant 0.000000e+00 : f32
      %141 = vector.broadcast %cst_63 : f32 to vector<32x128xf32>
      %c0_64 = arith.constant 0 : index
      %c0_65 = arith.constant 0 : index
      %142 = vector.load %arg9[%c0_64, %c0_65] : memref<32x128xf32, #tpu.memory_space<vmem>>, vector<32x128xf32>
      tpu.vector_store %arg9[%c0_64, %c0_65], %141 {strides = array<i32>} : memref<32x128xf32, #tpu.memory_space<vmem>>, vector<32x128xf32>,
    } else {
    }
    %c0 = arith.constant 0 : index
    %c0_1 = arith.constant 0 : index
    %3 = vector.load %arg3[%c0, %c0_1] : memref<28x128xf32, #tpu.memory_space<vmem>>, vector<28x128xf32>
    %c0_2 = arith.constant 0 : index
    %c0_3 = arith.constant 0 : index
    %4 = vector.load %arg4[%c0_2, %c0_3] : memref<128x128xf32, #tpu.memory_space<vmem>>, vector<128x128xf32>
    %c0_4 = arith.constant 0 : index
    %c0_5 = arith.constant 0 : index
    %5 = vector.load %arg5[%c0_4, %c0_5] : memref<1x128xf32, #tpu.memory_space<vmem>>, vector<1x128xf32>
    %c0_6 = arith.constant 0 : index
    %c0_7 = arith.constant 0 : index
    %6 = vector.load %arg9[%c0_6, %c0_7] : memref<32x128xf32, #tpu.memory_space<vmem>>, vector<16x128xf32>
    %c16 = arith.constant 16 : index
    %c0_8 = arith.constant 0 : index
    %7 = vector.load %arg9[%c16, %c0_8] : memref<32x128xf32, #tpu.memory_space<vmem>>, vector<16x128xf32>
    %c0_9 = arith.constant 0 : index
    %c0_10 = arith.constant 0 : index
    %c0_11 = arith.constant 0 : index
    %8 = vector.load %arg2[%c0_9, %c0_10, %c0_11] : memref<8x32x28xf32, #tpu.memory_space<vmem>>, vector<1x32x28xf32>
    %9 = vector.shape_cast %8 : vector<1x32x28xf32> to vector<32x28xf32>
    %10 = vector.extract_strided_slice %9 {offsets = [0, 0], sizes = [16, 28], strides = [1, 1]} : vector<32x28xf32> to vector<16x28xf32>
    %cst = arith.constant dense<0.000000e+00> : vector<16x128xf32>
    %11 = tpu.matmul %10, %3, %cst {dimension_numbers = #tpu.dot_dimension_numbers<[1], [0], [0], [1], [0, 0, 1, 1], [], []>} : vector<16x28xf32>, vector<28x128xf32>, vector<16x128xf32> -> vector<16x128xf32>
    %12 = vector.broadcast %5 : vector<1x128xf32> to vector<16x128xf32>
    %13 = arith.addf %11, %12 : vector<16x128xf32>
    %14 = vector.extract_strided_slice %9 {offsets = [16, 0], sizes = [16, 28], strides = [1, 1]} : vector<32x28xf32> to vector<16x28xf32>
    %cst_12 = arith.constant dense<0.000000e+00> : vector<16x128xf32>
    %15 = tpu.matmul %14, %3, %cst_12 {dimension_numbers = #tpu.dot_dimension_numbers<[1], [0], [0], [1], [0, 0, 1, 1], [], []>} : vector<16x28xf32>, vector<28x128xf32>, vector<16x128xf32> -> vector<16x128xf32>
    %16 = vector.broadcast %5 : vector<1x128xf32> to vector<16x128xf32>
    %17 = arith.addf %15, %16 : vector<16x128xf32>
    %cst_13 = arith.constant dense<0.000000e+00> : vector<16x128xf32>
    %18 = tpu.matmul %6, %4, %cst_13 {dimension_numbers = #tpu.dot_dimension_numbers<[1], [0], [0], [1], [0, 0, 1, 1], [], []>} : vector<16x128xf32>, vector<128x128xf32>, vector<16x128xf32> -> vector<16x128xf32>
    %19 = arith.addf %18, %13 : vector<16x128xf32>
    %cst_14 = arith.constant dense<0.000000e+00> : vector<16x128xf32>
    %20 = tpu.matmul %7, %4, %cst_14 {dimension_numbers = #tpu.dot_dimension_numbers<[1], [0], [0], [1], [0, 0, 1, 1], [], []>} : vector<16x128xf32>, vector<128x128xf32>, vector<16x128xf32> -> vector<16x128xf32>
    %21 = arith.addf %20, %17 : vector<16x128xf32>
    %22 = math.tanh %19 : vector<16x128xf32>
    %23 = math.tanh %21 : vector<16x128xf32>
    %c1 = arith.constant 1 : index
    %c0_15 = arith.constant 0 : index
    %c0_16 = arith.constant 0 : index
    %24 = vector.load %arg2[%c1, %c0_15, %c0_16] : memref<8x32x28xf32, #tpu.memory_space<vmem>>, vector<1x32x28xf32>
    %25 = vector.shape_cast %24 : vector<1x32x28xf32> to vector<32x28xf32>
    %26 = vector.extract_strided_slice %25 {offsets = [0, 0], sizes = [16, 28], strides = [1, 1]} : vector<32x28xf32> to vector<16x28xf32>
    %cst_17 = arith.constant dense<0.000000e+00> : vector<16x128xf32>
    %27 = tpu.matmul %26, %3, %cst_17 {dimension_numbers = #tpu.dot_dimension_numbers<[1], [0], [0], [1], [0, 0, 1, 1], [], []>} : vector<16x28xf32>, vector<28x128xf32>, vector<16x128xf32> -> vector<16x128xf32>
    %28 = vector.broadcast %5 : vector<1x128xf32> to vector<16x128xf32>
    %29 = arith.addf %27, %28 : vector<16x128xf32>
    %30 = vector.extract_strided_slice %25 {offsets = [16, 0], sizes = [16, 28], strides = [1, 1]} : vector<32x28xf32> to vector<16x28xf32>
    %cst_18 = arith.constant dense<0.000000e+00> : vector<16x128xf32>
    %31 = tpu.matmul %30, %3, %cst_18 {dimension_numbers = #tpu.dot_dimension_numbers<[1], [0], [0], [1], [0, 0, 1, 1], [], []>} : vector<16x28xf32>, vector<28x128xf32>, vector<16x128xf32> -> vector<16x128xf32>
    %32 = vector.broadcast %5 : vector<1x128xf32> to vector<16x128xf32>
    %33 = arith.addf %31, %32 : vector<16x128xf32>
    %cst_19 = arith.constant dense<0.000000e+00> : vector<16x128xf32>
    %34 = tpu.matmul %22, %4, %cst_19 {dimension_numbers = #tpu.dot_dimension_numbers<[1], [0], [0], [1], [0, 0, 1, 1], [], []>} : vector<16x128xf32>, vector<128x128xf32>, vector<16x128xf32> -> vector<16x128xf32>
    %35 = arith.addf %34, %29 : vector<16x128xf32>
    %cst_20 = arith.constant dense<0.000000e+00> : vector<16x128xf32>
    %36 = tpu.matmul %23, %4, %cst_20 {dimension_numbers = #tpu.dot_dimension_numbers<[1], [0], [0], [1], [0, 0, 1, 1], [], []>} : vector<16x128xf32>, vector<128x128xf32>, vector<16x128xf32> -> vector<16x128xf32>
    %37 = arith.addf %36, %33 : vector<16x128xf32>
    %38 = math.tanh %35 : vector<16x128xf32>
    %39 = math.tanh %37 : vector<16x128xf32>
    %c2 = arith.constant 2 : index
    %c0_21 = arith.constant 0 : index
    %c0_22 = arith.constant 0 : index
    %40 = vector.load %arg2[%c2, %c0_21, %c0_22] : memref<8x32x28xf32, #tpu.memory_space<vmem>>, vector<1x32x28xf32>
    %41 = vector.shape_cast %40 : vector<1x32x28xf32> to vector<32x28xf32>
    %42 = vector.extract_strided_slice %41 {offsets = [0, 0], sizes = [16, 28], strides = [1, 1]} : vector<32x28xf32> to vector<16x28xf32>
    %cst_23 = arith.constant dense<0.000000e+00> : vector<16x128xf32>
    %43 = tpu.matmul %42, %3, %cst_23 {dimension_numbers = #tpu.dot_dimension_numbers<[1], [0], [0], [1], [0, 0, 1, 1], [], []>} : vector<16x28xf32>, vector<28x128xf32>, vector<16x128xf32> -> vector<16x128xf32>
    %44 = vector.broadcast %5 : vector<1x128xf32> to vector<16x128xf32>
    %45 = arith.addf %43, %44 : vector<16x128xf32>
    %46 = vector.extract_strided_slice %41 {offsets = [16, 0], sizes = [16, 28], strides = [1, 1]} : vector<32x28xf32> to vector<16x28xf32>
    %cst_24 = arith.constant dense<0.000000e+00> : vector<16x128xf32>
    %47 = tpu.matmul %46, %3, %cst_24 {dimension_numbers = #tpu.dot_dimension_numbers<[1], [0], [0], [1], [0, 0, 1, 1], [], []>} : vector<16x28xf32>, vector<28x128xf32>, vector<16x128xf32> -> vector<16x128xf32>
    %48 = vector.broadcast %5 : vector<1x128xf32> to vector<16x128xf32>
    %49 = arith.addf %47, %48 : vector<16x128xf32>
    %cst_25 = arith.constant dense<0.000000e+00> : vector<16x128xf32>
    %50 = tpu.matmul %38, %4, %cst_25 {dimension_numbers = #tpu.dot_dimension_numbers<[1], [0], [0], [1], [0, 0, 1, 1], [], []>} : vector<16x128xf32>, vector<128x128xf32>, vector<16x128xf32> -> vector<16x128xf32>
    %51 = arith.addf %50, %45 : vector<16x128xf32>
    %cst_26 = arith.constant dense<0.000000e+00> : vector<16x128xf32>
    %52 = tpu.matmul %39, %4, %cst_26 {dimension_numbers = #tpu.dot_dimension_numbers<[1], [0], [0], [1], [0, 0, 1, 1], [], []>} : vector<16x128xf32>, vector<128x128xf32>, vector<16x128xf32> -> vector<16x128xf32>
    %53 = arith.addf %52, %49 : vector<16x128xf32>
    %54 = math.tanh %51 : vector<16x128xf32>
    %55 = math.tanh %53 : vector<16x128xf32>
    %c3 = arith.constant 3 : index
    %c0_27 = arith.constant 0 : index
    %c0_28 = arith.constant 0 : index
    %56 = vector.load %arg2[%c3, %c0_27, %c0_28] : memref<8x32x28xf32, #tpu.memory_space<vmem>>, vector<1x32x28xf32>
    %57 = vector.shape_cast %56 : vector<1x32x28xf32> to vector<32x28xf32>
    %58 = vector.extract_strided_slice %57 {offsets = [0, 0], sizes = [16, 28], strides = [1, 1]} : vector<32x28xf32> to vector<16x28xf32>
    %cst_29 = arith.constant dense<0.000000e+00> : vector<16x128xf32>
    %59 = tpu.matmul %58, %3, %cst_29 {dimension_numbers = #tpu.dot_dimension_numbers<[1], [0], [0], [1], [0, 0, 1, 1], [], []>} : vector<16x28xf32>, vector<28x128xf32>, vector<16x128xf32> -> vector<16x128xf32>
    %60 = vector.broadcast %5 : vector<1x128xf32> to vector<16x128xf32>
    %61 = arith.addf %59, %60 : vector<16x128xf32>
    %62 = vector.extract_strided_slice %57 {offsets = [16, 0], sizes = [16, 28], strides = [1, 1]} : vector<32x28xf32> to vector<16x28xf32>
    %cst_30 = arith.constant dense<0.000000e+00> : vector<16x128xf32>
    %63 = tpu.matmul %62, %3, %cst_30 {dimension_numbers = #tpu.dot_dimension_numbers<[1], [0], [0], [1], [0, 0, 1, 1], [], []>} : vector<16x28xf32>, vector<28x128xf32>, vector<16x128xf32> -> vector<16x128xf32>
    %64 = vector.broadcast %5 : vector<1x128xf32> to vector<16x128xf32>
    %65 = arith.addf %63, %64 : vector<16x128xf32>
    %cst_31 = arith.constant dense<0.000000e+00> : vector<16x128xf32>
    %66 = tpu.matmul %54, %4, %cst_31 {dimension_numbers = #tpu.dot_dimension_numbers<[1], [0], [0], [1], [0, 0, 1, 1], [], []>} : vector<16x128xf32>, vector<128x128xf32>, vector<16x128xf32> -> vector<16x128xf32>
    %67 = arith.addf %66, %61 : vector<16x128xf32>
    %cst_32 = arith.constant dense<0.000000e+00> : vector<16x128xf32>
    %68 = tpu.matmul %55, %4, %cst_32 {dimension_numbers = #tpu.dot_dimension_numbers<[1], [0], [0], [1], [0, 0, 1, 1], [], []>} : vector<16x128xf32>, vector<128x128xf32>, vector<16x128xf32> -> vector<16x128xf32>
    %69 = arith.addf %68, %65 : vector<16x128xf32>
    %70 = math.tanh %67 : vector<16x128xf32>
    %71 = math.tanh %69 : vector<16x128xf32>
    %c4 = arith.constant 4 : index
    %c0_33 = arith.constant 0 : index
    %c0_34 = arith.constant 0 : index
    %72 = vector.load %arg2[%c4, %c0_33, %c0_34] : memref<8x32x28xf32, #tpu.memory_space<vmem>>, vector<1x32x28xf32>
    %73 = vector.shape_cast %72 : vector<1x32x28xf32> to vector<32x28xf32>
    %74 = vector.extract_strided_slice %73 {offsets = [0, 0], sizes = [16, 28], strides = [1, 1]} : vector<32x28xf32> to vector<16x28xf32>
    %cst_35 = arith.constant dense<0.000000e+00> : vector<16x128xf32>
    %75 = tpu.matmul %74, %3, %cst_35 {dimension_numbers = #tpu.dot_dimension_numbers<[1], [0], [0], [1], [0, 0, 1, 1], [], []>} : vector<16x28xf32>, vector<28x128xf32>, vector<16x128xf32> -> vector<16x128xf32>
    %76 = vector.broadcast %5 : vector<1x128xf32> to vector<16x128xf32>
    %77 = arith.addf %75, %76 : vector<16x128xf32>
    %78 = vector.extract_strided_slice %73 {offsets = [16, 0], sizes = [16, 28], strides = [1, 1]} : vector<32x28xf32> to vector<16x28xf32>
    %cst_36 = arith.constant dense<0.000000e+00> : vector<16x128xf32>
    %79 = tpu.matmul %78, %3, %cst_36 {dimension_numbers = #tpu.dot_dimension_numbers<[1], [0], [0], [1], [0, 0, 1, 1], [], []>} : vector<16x28xf32>, vector<28x128xf32>, vector<16x128xf32> -> vector<16x128xf32>
    %80 = vector.broadcast %5 : vector<1x128xf32> to vector<16x128xf32>
    %81 = arith.addf %79, %80 : vector<16x128xf32>
    %cst_37 = arith.constant dense<0.000000e+00> : vector<16x128xf32>
    %82 = tpu.matmul %70, %4, %cst_37 {dimension_numbers = #tpu.dot_dimension_numbers<[1], [0], [0], [1], [0, 0, 1, 1], [], []>} : vector<16x128xf32>, vector<128x128xf32>, vector<16x128xf32> -> vector<16x128xf32>
    %83 = arith.addf %82, %77 : vector<16x128xf32>
    %cst_38 = arith.constant dense<0.000000e+00> : vector<16x128xf32>
    %84 = tpu.matmul %71, %4, %cst_38 {dimension_numbers = #tpu.dot_dimension_numbers<[1], [0], [0], [1], [0, 0, 1, 1], [], []>} : vector<16x128xf32>, vector<128x128xf32>, vector<16x128xf32> -> vector<16x128xf32>
    %85 = arith.addf %84, %81 : vector<16x128xf32>
    %86 = math.tanh %83 : vector<16x128xf32>
    %87 = math.tanh %85 : vector<16x128xf32>
    %c5 = arith.constant 5 : index
    %c0_39 = arith.constant 0 : index
    %c0_40 = arith.constant 0 : index
    %88 = vector.load %arg2[%c5, %c0_39, %c0_40] : memref<8x32x28xf32, #tpu.memory_space<vmem>>, vector<1x32x28xf32>
    %89 = vector.shape_cast %88 : vector<1x32x28xf32> to vector<32x28xf32>
    %90 = vector.extract_strided_slice %89 {offsets = [0, 0], sizes = [16, 28], strides = [1, 1]} : vector<32x28xf32> to vector<16x28xf32>
    %cst_41 = arith.constant dense<0.000000e+00> : vector<16x128xf32>
    %91 = tpu.matmul %90, %3, %cst_41 {dimension_numbers = #tpu.dot_dimension_numbers<[1], [0], [0], [1], [0, 0, 1, 1], [], []>} : vector<16x28xf32>, vector<28x128xf32>, vector<16x128xf32> -> vector<16x128xf32>
    %92 = vector.broadcast %5 : vector<1x128xf32> to vector<16x128xf32>
    %93 = arith.addf %91, %92 : vector<16x128xf32>
    %94 = vector.extract_strided_slice %89 {offsets = [16, 0], sizes = [16, 28], strides = [1, 1]} : vector<32x28xf32> to vector<16x28xf32>
    %cst_42 = arith.constant dense<0.000000e+00> : vector<16x128xf32>
    %95 = tpu.matmul %94, %3, %cst_42 {dimension_numbers = #tpu.dot_dimension_numbers<[1], [0], [0], [1], [0, 0, 1, 1], [], []>} : vector<16x28xf32>, vector<28x128xf32>, vector<16x128xf32> -> vector<16x128xf32>
    %96 = vector.broadcast %5 : vector<1x128xf32> to vector<16x128xf32>
    %97 = arith.addf %95, %96 : vector<16x128xf32>
    %cst_43 = arith.constant dense<0.000000e+00> : vector<16x128xf32>
    %98 = tpu.matmul %86, %4, %cst_43 {dimension_numbers = #tpu.dot_dimension_numbers<[1], [0], [0], [1], [0, 0, 1, 1], [], []>} : vector<16x128xf32>, vector<128x128xf32>, vector<16x128xf32> -> vector<16x128xf32>
    %99 = arith.addf %98, %93 : vector<16x128xf32>
    %cst_44 = arith.constant dense<0.000000e+00> : vector<16x128xf32>
    %100 = tpu.matmul %87, %4, %cst_44 {dimension_numbers = #tpu.dot_dimension_numbers<[1], [0], [0], [1], [0, 0, 1, 1], [], []>} : vector<16x128xf32>, vector<128x128xf32>, vector<16x128xf32> -> vector<16x128xf32>
    %101 = arith.addf %100, %97 : vector<16x128xf32>
    %102 = math.tanh %99 : vector<16x128xf32>
    %103 = math.tanh %101 : vector<16x128xf32>
    %c6 = arith.constant 6 : index
    %c0_45 = arith.constant 0 : index
    %c0_46 = arith.constant 0 : index
    %104 = vector.load %arg2[%c6, %c0_45, %c0_46] : memref<8x32x28xf32, #tpu.memory_space<vmem>>, vector<1x32x28xf32>
    %105 = vector.shape_cast %104 : vector<1x32x28xf32> to vector<32x28xf32>
    %106 = vector.extract_strided_slice %105 {offsets = [0, 0], sizes = [16, 28], strides = [1, 1]} : vector<32x28xf32> to vector<16x28xf32>
    %cst_47 = arith.constant dense<0.000000e+00> : vector<16x128xf32>
    %107 = tpu.matmul %106, %3, %cst_47 {dimension_numbers = #tpu.dot_dimension_numbers<[1], [0], [0], [1], [0, 0, 1, 1], [], []>} : vector<16x28xf32>, vector<28x128xf32>, vector<16x128xf32> -> vector<16x128xf32>
    %108 = vector.broadcast %5 : vector<1x128xf32> to vector<16x128xf32>
    %109 = arith.addf %107, %108 : vector<16x128xf32>
    %110 = vector.extract_strided_slice %105 {offsets = [16, 0], sizes = [16, 28], strides = [1, 1]} : vector<32x28xf32> to vector<16x28xf32>
    %cst_48 = arith.constant dense<0.000000e+00> : vector<16x128xf32>
    %111 = tpu.matmul %110, %3, %cst_48 {dimension_numbers = #tpu.dot_dimension_numbers<[1], [0], [0], [1], [0, 0, 1, 1], [], []>} : vector<16x28xf32>, vector<28x128xf32>, vector<16x128xf32> -> vector<16x128xf32>
    %112 = vector.broadcast %5 : vector<1x128xf32> to vector<16x128xf32>
    %113 = arith.addf %111, %112 : vector<16x128xf32>
    %cst_49 = arith.constant dense<0.000000e+00> : vector<16x128xf32>
    %114 = tpu.matmul %102, %4, %cst_49 {dimension_numbers = #tpu.dot_dimension_numbers<[1], [0], [0], [1], [0, 0, 1, 1], [], []>} : vector<16x128xf32>, vector<128x128xf32>, vector<16x128xf32> -> vector<16x128xf32>
    %115 = arith.addf %114, %109 : vector<16x128xf32>
    %cst_50 = arith.constant dense<0.000000e+00> : vector<16x128xf32>
    %116 = tpu.matmul %103, %4, %cst_50 {dimension_numbers = #tpu.dot_dimension_numbers<[1], [0], [0], [1], [0, 0, 1, 1], [], []>} : vector<16x128xf32>, vector<128x128xf32>, vector<16x128xf32> -> vector<16x128xf32>
    %117 = arith.addf %116, %113 : vector<16x128xf32>
    %118 = math.tanh %115 : vector<16x128xf32>
    %119 = math.tanh %117 : vector<16x128xf32>
    %c7 = arith.constant 7 : index
    %c0_51 = arith.constant 0 : index
    %c0_52 = arith.constant 0 : index
    %120 = vector.load %arg2[%c7, %c0_51, %c0_52] : memref<8x32x28xf32, #tpu.memory_space<vmem>>, vector<1x32x28xf32>
    %121 = vector.shape_cast %120 : vector<1x32x28xf32> to vector<32x28xf32>
    %122 = vector.extract_strided_slice %121 {offsets = [0, 0], sizes = [16, 28], strides = [1, 1]} : vector<32x28xf32> to vector<16x28xf32>
    %cst_53 = arith.constant dense<0.000000e+00> : vector<16x128xf32>
    %123 = tpu.matmul %122, %3, %cst_53 {dimension_numbers = #tpu.dot_dimension_numbers<[1], [0], [0], [1], [0, 0, 1, 1], [], []>} : vector<16x28xf32>, vector<28x128xf32>, vector<16x128xf32> -> vector<16x128xf32>
    %124 = vector.broadcast %5 : vector<1x128xf32> to vector<16x128xf32>
    %125 = arith.addf %123, %124 : vector<16x128xf32>
    %126 = vector.extract_strided_slice %121 {offsets = [16, 0], sizes = [16, 28], strides = [1, 1]} : vector<32x28xf32> to vector<16x28xf32>
    %cst_54 = arith.constant dense<0.000000e+00> : vector<16x128xf32>
    %127 = tpu.matmul %126, %3, %cst_54 {dimension_numbers = #tpu.dot_dimension_numbers<[1], [0], [0], [1], [0, 0, 1, 1], [], []>} : vector<16x28xf32>, vector<28x128xf32>, vector<16x128xf32> -> vector<16x128xf32>
    %128 = vector.broadcast %5 : vector<1x128xf32> to vector<16x128xf32>
    %129 = arith.addf %127, %128 : vector<16x128xf32>
    %cst_55 = arith.constant dense<0.000000e+00> : vector<16x128xf32>
    %130 = tpu.matmul %118, %4, %cst_55 {dimension_numbers = #tpu.dot_dimension_numbers<[1], [0], [0], [1], [0, 0, 1, 1], [], []>} : vector<16x128xf32>, vector<128x128xf32>, vector<16x128xf32> -> vector<16x128xf32>
    %131 = arith.addf %130, %125 : vector<16x128xf32>
    %cst_56 = arith.constant dense<0.000000e+00> : vector<16x128xf32>
    %132 = tpu.matmul %119, %4, %cst_56 {dimension_numbers = #tpu.dot_dimension_numbers<[1], [0], [0], [1], [0, 0, 1, 1], [], []>} : vector<16x128xf32>, vector<128x128xf32>, vector<16x128xf32> -> vector<16x128xf32>
    %133 = arith.addf %132, %129 : vector<16x128xf32>
    %134 = math.tanh %131 : vector<16x128xf32>
    %135 = math.tanh %133 : vector<16x128xf32>
    %c0_57 = arith.constant 0 : index
    %c0_58 = arith.constant 0 : index
    %136 = vector.load %arg9[%c0_57, %c0_58] : memref<32x128xf32, #tpu.memory_space<vmem>>, vector<16x128xf32>
    tpu.vector_store %arg9[%c0_57, %c0_58], %134 {strides = array<i32>} : memref<32x128xf32, #tpu.memory_space<vmem>>, vector<16x128xf32>,
    %c16_59 = arith.constant 16 : index
    %c0_60 = arith.constant 0 : index
    %137 = vector.load %arg9[%c16_59, %c0_60] : memref<32x128xf32, #tpu.memory_space<vmem>>, vector<16x128xf32>
    tpu.vector_store %arg9[%c16_59, %c0_60], %135 {strides = array<i32>} : memref<32x128xf32, #tpu.memory_space<vmem>>, vector<16x128xf32>,
    %c0_i32_61 = arith.constant 0 : i32
    %138 = arith.cmpi eq, %arg1, %c0_i32_61 : i32
    %139 = arith.extui %138 : i1 to i32
    %c0_i32_62 = arith.constant 0 : i32
    %140 = arith.cmpi ne, %139, %c0_i32_62 : i32
    scf.if %140 {
      %c0_63 = arith.constant 0 : index
      %c0_64 = arith.constant 0 : index
      %141 = vector.load %arg6[%c0_63, %c0_64] : memref<128x128xf32, #tpu.memory_space<vmem>>, vector<128x128xf32>
      %c0_65 = arith.constant 0 : index
      %c0_66 = arith.constant 0 : index
      %142 = vector.load %arg7[%c0_65, %c0_66] : memref<1x128xf32, #tpu.memory_space<vmem>>, vector<1x128xf32>
      %cst_67 = arith.constant dense<0.000000e+00> : vector<16x128xf32>
      %143 = tpu.matmul %134, %141, %cst_67 {dimension_numbers = #tpu.dot_dimension_numbers<[1], [0], [0], [1], [0, 0, 1, 1], [], []>} : vector<16x128xf32>, vector<128x128xf32>, vector<16x128xf32> -> vector<16x128xf32>
      %144 = vector.broadcast %142 : vector<1x128xf32> to vector<16x128xf32>
      %145 = arith.addf %143, %144 : vector<16x128xf32>
      %c0_68 = arith.constant 0 : index
      %c0_69 = arith.constant 0 : index
      %146 = vector.load %arg8[%c0_68, %c0_69] : memref<32x128xf32, #tpu.memory_space<vmem>>, vector<16x128xf32>
      tpu.vector_store %arg8[%c0_68, %c0_69], %145 {strides = array<i32>} : memref<32x128xf32, #tpu.memory_space<vmem>>, vector<16x128xf32>,
      %cst_70 = arith.constant dense<0.000000e+00> : vector<16x128xf32>
      %147 = tpu.matmul %135, %141, %cst_70 {dimension_numbers = #tpu.dot_dimension_numbers<[1], [0], [0], [1], [0, 0, 1, 1], [], []>} : vector<16x128xf32>, vector<128x128xf32>, vector<16x128xf32> -> vector<16x128xf32>
      %148 = vector.broadcast %142 : vector<1x128xf32> to vector<16x128xf32>
      %149 = arith.addf %147, %148 : vector<16x128xf32>
      %c16_71 = arith.constant 16 : index
      %c0_72 = arith.constant 0 : index
      %150 = vector.load %arg8[%c16_71, %c0_72] : memref<32x128xf32, #tpu.memory_space<vmem>>, vector<16x128xf32>
      tpu.vector_store %arg8[%c16_71, %c0_72], %149 {strides = array<i32>} : memref<32x128xf32, #tpu.memory_space<vmem>>, vector<16x128xf32>,
    } else {
    }
    return
  }
  func.func @transform_0(%arg0: i32, %arg1: i32) -> (i32, i32, i32) {
    %c0_i32 = arith.constant 0 : i32
    %c0_i32_0 = arith.constant 0 : i32
    return %arg1, %arg0, %c0_i32 : i32, i32, i32
  }
  func.func @transform_1(%arg0: i32, %arg1: i32) -> (i32, i32) {
    %c0_i32 = arith.constant 0 : i32
    %c0_i32_0 = arith.constant 0 : i32
    %c0_i32_1 = arith.constant 0 : i32
    return %c0_i32, %c0_i32_0 : i32, i32
  }
  func.func @transform_2(%arg0: i32, %arg1: i32) -> (i32, i32) {
    %c0_i32 = arith.constant 0 : i32
    %c0_i32_0 = arith.constant 0 : i32
    %c0_i32_1 = arith.constant 0 : i32
    return %c0_i32, %c0_i32_0 : i32, i32
  }
  func.func @transform_3(%arg0: i32, %arg1: i32) -> (i32, i32) {
    %c0_i32 = arith.constant 0 : i32
    %c0_i32_0 = arith.constant 0 : i32
    %c0_i32_1 = arith.constant 0 : i32
    return %c0_i32, %c0_i32_0 : i32, i32
  }
  func.func @transform_4(%arg0: i32, %arg1: i32) -> (i32, i32) {
    %c0_i32 = arith.constant 0 : i32
    %c0_i32_0 = arith.constant 0 : i32
    %c0_i32_1 = arith.constant 0 : i32
    return %c0_i32, %c0_i32_0 : i32, i32
  }
  func.func @transform_5(%arg0: i32, %arg1: i32) -> (i32, i32) {
    %c0_i32 = arith.constant 0 : i32
    %c0_i32_0 = arith.constant 0 : i32
    %c0_i32_1 = arith.constant 0 : i32
    return %c0_i32, %c0_i32_0 : i32, i32
  }
  func.func @transform_6(%arg0: i32, %arg1: i32) -> (i32, i32) {
    %c0_i32 = arith.constant 0 : i32
    %c0_i32_0 = arith.constant 0 : i32
    return %arg0, %c0_i32 : i32, i32
  }
}

</mosaic_0001>

<bundles_post_ra>
// kernel: tpu_custom_call.1
= control target key start
LH: loop header
LB: loop body
LE: loop exit
PB: predicated region body
PF: predicated region fallthrough
CT: control target
= control target key end

     0   :  { %11 = vsyncpa [#allocation5], 0  ;;  %s6495_s0 = inlined_call_operand.vmem [shape: f32[8,64,28], index: 0, kind: input, shape index: {}]   ;;  %s6496_s1 = inlined_call_operand.vmem [shape: f32[28,128], index: 1, kind: input, shape index: {}]   ;;  %s6497_s2 = inlined_call_operand.vmem [shape: f32[128,128], index: 2, kind: input, shape index: {}]   ;;  %s6498_s3 = inlined_call_operand.vmem [shape: f32[1,128], index: 3, kind: input, shape index: {}]   ;;  %s6499_s4 = inlined_call_operand.vmem [shape: f32[128,128], index: 4, kind: input, shape index: {}]   ;;  %s6500_s5 = inlined_call_operand.vmem [shape: f32[1,128], index: 5, kind: input, shape index: {}]   ;;  %s6501_s6 = inlined_call_operand.hbm [shape: f32[64,128], index: 6, kind: output, shape index: {}]  }
   0x1   :  { %13 = vsyncpa [#allocation5 + $0x1], 0  ;;  %s5681_s21 = smov 0   ;;  %s5683_s22 = smov 0  }
   0x2   :  { %s5685_s23 = smov 0   ;;  %s5687_s24 = smov 0  }
   0x3   :  { %s5689_s25 = smov 0   ;;  %s5691_s26 = smov 0  }
   0x4 LB: > { %s3317_s27 = sadd.s32 4294967295, %s5639_s26   ;;  %s3318_s28 = sadd.s32 4294967294, %s5639_s26   ;;  %s5639_s26 = sphi %s5691_s26, %s19_s26   ;;  %s5635_s25 = sphi %s5689_s25, %s6510_s25   ;;  %s5631_s24 = sphi %s5687_s24, %s6509_s24   ;;  %s5627_s23 = sphi %s5685_s23, %s6508_s23   ;;  %s5623_s22 = sphi %s5683_s22, %s6507_s22   ;;  %s5619_s21 = sphi %s5681_s21, %s6506_s21  }
   0x5   : > { %s31_s29 = sadd.s32 1, %s5635_s25  ;;  %s40_s30 = sadd.s32 1, %s5627_s23 }
   0x6   : > { %p33_p0 = scmp.ge.s32.totalorder %s31_s29, 2  ;;  %p47_p1 = scmp.ne.s32.totalorder %s5627_s23, %s5623_s22 }
   0x7   : > { %p48_p2 = scmp.eq.s32.totalorder %s5639_s26, 0  ;;  %p182_p3 = scmp.eq.s32.totalorder %s3317_s27, 1 }
   0x8   : > { %s6512_s29 = smov (%p33_p0, %s31_s29), 0  ;;  %p187_p6 = scmp.ne.s32.totalorder %s5623_s22, %s5619_s21 }
   0x9   : > { %p49_p4 = por %p48_p2, %p47_p1  ;;  %p5720_p5 = por %p182_p3, %p47_p1 }
   0xa   : > { %s36_s8 = ssub.s32 %s5635_s25, %s6512_s29  ;;  %p188_p8 = scmp.eq.s32.totalorder %s3318_s28, 1 }
   0xb   : > { %p38_p7 = scmp.eq.s32.totalorder %s36_s8, 0  ;;  %p3320_p10 = scmp.ge.s32.totalorder %s5639_s26, 2 }
   0xc   : > { %p5731_p9 = por %p188_p8, %p187_p6 }
   0xd   : > { %s5729_s9 = scalar_select %p38_p7, %s5627_s23, %s40_s30  }
   0xe   : > { %219 = sbr.rel (%p3320_p10) target bundleno = 41 (0x29), region = 36 }
  0x15   : > { %222 = sbr.rel (!%p49_p4) target bundleno = 41 (0x29), region = 40  ;;  %s224_s11 = sand.u32 (%p49_p4), 1, %s5627_s23  }
  0x16   : > { %s3410_s12 = sshll.u32 (%p49_p4), %s5635_s25, 5  ;;  %s3321_s13 = sshll.u32 (%p49_p4), %s224_s11, 8 }
  0x17   : > { %s5743_s16 = scalar_lea.vmem (%p49_p4), %s6495_s0, %s3410_s12  ;;  %s5748_s17 = scalar_lea.vmem (%p49_p4), [#allocation3], %s3321_s13 }
  0x18   : > { %v322_v0 = vld [vmem:[%s5743_s16] sm:$0xff] (%p49_p4)  ;;  %v324_v1 = vld [vmem:[%s5743_s16 + $0x8] sm:$0xff] (%p49_p4)  ;;  %v326_v2 = vld [vmem:[%s5743_s16 + $0x10] sm:$0xff] (%p49_p4) }
  0x19   : > { %323 = vst [vmem:[%s5748_s17] sm:$0xff] (%p49_p4), %v322_v0  ;;  %325 = vst [vmem:[%s5748_s17 + $0x8] sm:$0xff] (%p49_p4), %v324_v1  ;;  %v328_v3 = vld [vmem:[%s5743_s16 + $0x18] sm:$0xff] (%p49_p4)  ;;  %v330_v4 = vld [vmem:[%s5743_s16 + $0x40] sm:$0xff] (%p49_p4) }
  0x1a   : > { %327 = vst [vmem:[%s5748_s17 + $0x10] sm:$0xff] (%p49_p4), %v326_v2  ;;  %v332_v5 = vld [vmem:[%s5743_s16 + $0x48] sm:$0xff] (%p49_p4)  ;;  %329 = vst [vmem:[%s5748_s17 + $0x18] sm:$0xff] (%p49_p4), %v328_v3  ;;  %v334_v6 = vld [vmem:[%s5743_s16 + $0x50] sm:$0xff] (%p49_p4) }
  0x1b   : > { %331 = vst [vmem:[%s5748_s17 + $0x20] sm:$0xff] (%p49_p4), %v330_v4  ;;  %333 = vst [vmem:[%s5748_s17 + $0x28] sm:$0xff] (%p49_p4), %v332_v5  ;;  %v336_v7 = vld [vmem:[%s5743_s16 + $0x58] sm:$0xff] (%p49_p4)  ;;  %v338_v8 = vld [vmem:[%s5743_s16 + $0x80] sm:$0xff] (%p49_p4) }
  0x1c   : > { %335 = vst [vmem:[%s5748_s17 + $0x30] sm:$0xff] %v334_v6  ;;  %337 = vst [vmem:[%s5748_s17 + $0x38] sm:$0xff] %v336_v7  ;;  %v340_v9 = vld [vmem:[%s5743_s16 + $0x88] sm:$0xff]  ;;  %v342_v10 = vld [vmem:[%s5743_s16 + $0x90] sm:$0xff] }
  0x1d   : > { %339 = vst [vmem:[%s5748_s17 + $0x40] sm:$0xff] %v338_v8  ;;  %v344_v11 = vld [vmem:[%s5743_s16 + $0x98] sm:$0xff]  ;;  %341 = vst [vmem:[%s5748_s17 + $0x48] sm:$0xff] %v340_v9  ;;  %v346_v12 = vld [vmem:[%s5743_s16 + $0xc0] sm:$0xff] }
  0x1e   : > { %343 = vst [vmem:[%s5748_s17 + $0x50] sm:$0xff] %v342_v10  ;;  %345 = vst [vmem:[%s5748_s17 + $0x58] sm:$0xff] %v344_v11  ;;  %v348_v13 = vld [vmem:[%s5743_s16 + $0xc8] sm:$0xff]  ;;  %v350_v14 = vld [vmem:[%s5743_s16 + $0xd0] sm:$0xff] }
  0x1f   : > { %347 = vst [vmem:[%s5748_s17 + $0x60] sm:$0xff] %v346_v12  ;;  %349 = vst [vmem:[%s5748_s17 + $0x68] sm:$0xff] %v348_v13  ;;  %v352_v15 = vld [vmem:[%s5743_s16 + $0xd8] sm:$0xff]  ;;  %v354_v16 = vld [vmem:[%s5743_s16 + $0x100] sm:$0xff] }
  0x20   : > { %351 = vst [vmem:[%s5748_s17 + $0x70] sm:$0xff] %v350_v14  ;;  %v356_v17 = vld [vmem:[%s5743_s16 + $0x108] sm:$0xff]  ;;  %353 = vst [vmem:[%s5748_s17 + $0x78] sm:$0xff] %v352_v15  ;;  %v358_v18 = vld [vmem:[%s5743_s16 + $0x110] sm:$0xff] }
  0x21   : > { %355 = vst [vmem:[%s5748_s17 + $0x80] sm:$0xff] %v354_v16  ;;  %357 = vst [vmem:[%s5748_s17 + $0x88] sm:$0xff] %v356_v17  ;;  %v360_v19 = vld [vmem:[%s5743_s16 + $0x118] sm:$0xff]  ;;  %v362_v20 = vld [vmem:[%s5743_s16 + $0x140] sm:$0xff] }
  0x22   : > { %359 = vst [vmem:[%s5748_s17 + $0x90] sm:$0xff] %v358_v18  ;;  %361 = vst [vmem:[%s5748_s17 + $0x98] sm:$0xff] %v360_v19  ;;  %v364_v21 = vld [vmem:[%s5743_s16 + $0x148] sm:$0xff]  ;;  %v366_v22 = vld [vmem:[%s5743_s16 + $0x150] sm:$0xff] }
  0x23   : > { %363 = vst [vmem:[%s5748_s17 + $0xa0] sm:$0xff] %v362_v20  ;;  %v368_v23 = vld [vmem:[%s5743_s16 + $0x158] sm:$0xff]  ;;  %365 = vst [vmem:[%s5748_s17 + $0xa8] sm:$0xff] %v364_v21  ;;  %v370_v24 = vld [vmem:[%s5743_s16 + $0x180] sm:$0xff] }
  0x24   : > { %367 = vst [vmem:[%s5748_s17 + $0xb0] sm:$0xff] %v366_v22  ;;  %369 = vst [vmem:[%s5748_s17 + $0xb8] sm:$0xff] %v368_v23  ;;  %v372_v25 = vld [vmem:[%s5743_s16 + $0x188] sm:$0xff]  ;;  %v374_v26 = vld [vmem:[%s5743_s16 + $0x190] sm:$0xff] }
  0x25   : > { %371 = vst [vmem:[%s5748_s17 + $0xc0] sm:$0xff] %v370_v24  ;;  %373 = vst [vmem:[%s5748_s17 + $0xc8] sm:$0xff] %v372_v25  ;;  %v376_v27 = vld [vmem:[%s5743_s16 + $0x198] sm:$0xff]  ;;  %v378_v28 = vld [vmem:[%s5743_s16 + $0x1c0] sm:$0xff] }
  0x26   : > { %375 = vst [vmem:[%s5748_s17 + $0xd0] sm:$0xff] %v374_v26  ;;  %v380_v29 = vld [vmem:[%s5743_s16 + $0x1c8] sm:$0xff]  ;;  %377 = vst [vmem:[%s5748_s17 + $0xd8] sm:$0xff] %v376_v27  ;;  %v382_v30 = vld [vmem:[%s5743_s16 + $0x1d0] sm:$0xff] }
  0x27   : > { %379 = vst [vmem:[%s5748_s17 + $0xe0] sm:$0xff] %v378_v28  ;;  %381 = vst [vmem:[%s5748_s17 + $0xe8] sm:$0xff] %v380_v29  ;;  %v384_v31 = vld [vmem:[%s5743_s16 + $0x1d8] sm:$0xff] }
  0x28   : > { %383 = vst [vmem:[%s5748_s17 + $0xf0] sm:$0xff] %v382_v30  ;;  %385 = vst [vmem:[%s5748_s17 + $0xf8] sm:$0xff] %v384_v31 }
  0x29 PF: > { %p3324_p11 = scmp.ge.s32.totalorder %s5639_s26, 1  ;;  %p390_p12 = scmp.lt.s32.totalorder %s5639_s26, 3 }
  0x2b   : > { %p391_p13 = pnand %p3324_p11, %p390_p12 }
  0x2c   : > { %v437_v32 = vld [vmem:[%s6496_s1] sm:$0xff] (!%p391_p13)  ;;  %v438_v33 = vld [vmem:[%s6496_s1 + $0x8] sm:$0xff] (!%p391_p13)  ;;  %v439_v34 = vld [vmem:[%s6496_s1 + $0x10] sm:$0xff] (!%p391_p13)  ;;  %vm479_vm0 = vcmask (!%p391_p13), 1043456   ;;  %s5823_s8 = sand.u32 (!%p391_p13), 1, %s5623_s22   ;;  %vm5641_vm1 = vmmov (!%p391_p13), 1  }
  0x2d   : > { %394 = sbr.rel (%p391_p13) target bundleno = 2134 (0x856), region = 78  ;;  %v5825_v35 = vpack.c.bf16 (!%p391_p13), %v438_v33, %v437_v32  ;;  %v440_v36 = vld [vmem:[%s6496_s1 + $0x18] sm:$0xf] (!%p391_p13)  ;;  %s3325_s13 = sshll.u32 (!%p391_p13), %s5823_s8, 8  ;;  %vm5833_vm2 = vmpackc.low (!%p391_p13), %vm479_vm0, %vm5641_vm1  ;;  %v441_v39 = vld [vmem:[%s6497_s2] sm:$0xff] (!%p391_p13)  ;;  %vm472_vm3 = vcmask (!%p391_p13), 228352  }
  0x2e   : > { %v5831_v37 = vpack.c.bf16 (!%p391_p13), %v440_v36, %v439_v34  ;;  %v442_v40 = vld [vmem:[%s6497_s2 + $0x8] sm:$0xff] (!%p391_p13)  ;;  %s5845_s18 = scalar_lea.vmem (!%p391_p13), [#allocation3], %s3325_s13  ;;  %v443_v44 = vld [vmem:[%s6497_s2 + $0x10] sm:$0xff] (!%p391_p13)  ;;  %v444_v45 = vld [vmem:[%s6497_s2 + $0x18] sm:$0xff] (!%p391_p13)  ;;  %v5642_v54 = vmov (!%p391_p13), 0.0   ;;  %s3326_s17 = sshll.u32 (!%p391_p13), %s5823_s8, 5 }
  0x2f   : > { %4639 = vmatprep.subr.bf16.mxu0 (!%p391_p13), %v5825_v35  ;;  %4649 = vmatprep.subr.bf16.mxu1 (!%p391_p13), %v5825_v35  ;;  %v462_v41 = vld [vmem:[%s5845_s18] sm:$0xff] (!%p391_p13)  ;;  %v464_v42 = vld [vmem:[%s5845_s18 + $0x10] sm:$0xff] (!%p391_p13)  ;;  %v5857_v43 = vpack.c.bf16 (!%p391_p13), %v442_v40, %v441_v39  ;;  %v463_v46 = vld [vmem:[%s5845_s18 + $0x8] sm:$0xff] (!%p391_p13)  ;;  %v5877_v48 = vpack.c.bf16 (!%p391_p13), %v444_v45, %v443_v44  ;;  %s425_s27 = scalar_lea.vmem (!%p391_p13), [#allocation4], %s3326_s17  ;;  %s3411_s30 = sshll.u32 (!%p391_p13), %s5631_s24, 9 }
  0x30   : > { %4641 = vmatpush3.bf16.msra.mxu0 (!%p391_p13), %v5825_v35  ;;  %4651 = vmatpush3.bf16.msra.mxu1 (!%p391_p13), %v5825_v35  ;;  %v465_v47 = vld [vmem:[%s5845_s18 + $0x18] sm:$0xff] (!%p391_p13)  ;;  %v445_v49 = vld [vmem:[%s6497_s2 + $0x20] sm:$0xff] (!%p391_p13)  ;;  %v446_v50 = vld [vmem:[%s6497_s2 + $0x28] sm:$0xff] (!%p391_p13)  ;;  %s3238_s28 = sshll.u32 (!%p391_p13), %s425_s27, 4  ;;  %s6446_s12 = scalar_lea.hbm (!%p391_p13), %s6501_s6, %s3411_s30  ;;  %s6441_s28 = int_to_ptr.vmem [resolvable:$true] %s3238_s28 }
  0x31   : > { %4644 = vmatprep.subr.msk.bf16.mxu0 (!%p391_p13), %vm5833_vm2, %v5831_v37  ;;  %4654 = vmatprep.subr.msk.bf16.mxu1 (!%p391_p13), %vm5833_vm2, %v5831_v37  ;;  %v5891_v51 = vpack.c.bf16 (!%p391_p13), %v446_v50, %v445_v49  ;;  %v447_v52 = vld [vmem:[%s6497_s2 + $0x30] sm:$0xff] (!%p391_p13)  ;;  %v448_v53 = vld [vmem:[%s6497_s2 + $0x38] sm:$0xff] (!%p391_p13)  ;;  %v449_v56 = vld [vmem:[%s6497_s2 + $0x40] sm:$0xff] (!%p391_p13)  ;;  %s3225_s24 = scalar_lea.sflag (!%p391_p13), [#allocation5], %s5823_s8  ;;  %s5561_s13 = scalar_lea.vmem (!%p391_p13), %s6441_s28, 512 }
  0x32   : > { %3840 = vmatprep.mubr.msk.f32.mxu0 (!%p391_p13), %vm472_vm3, %v462_v41  ;;  %3851 = vmatprep.mubr.msk.f32.mxu1 (!%p391_p13), %vm472_vm3, %v464_v42  ;;  %v5903_v55 = vpack.c.bf16 (!%p391_p13), %v448_v53, %v447_v52  ;;  %v450_v57 = vld [vmem:[%s6497_s2 + $0x48] sm:$0xff] (!%p391_p13)  ;;  %v451_v59 = vld [vmem:[%s6497_s2 + $0x50] sm:$0xff] (!%p391_p13)  ;;  %v452_v60 = vld [vmem:[%s6497_s2 + $0x58] sm:$0xff] (!%p391_p13)  ;;  %p5562_p0 = scmp.ne.s32.totalorder (!%p391_p13), %s6441_s28, %s5561_s13  ;;  %s5643_s14 = smov (!%p391_p13), [#allocation4]  }
  0x33   : > { %v5915_v58 = vpack.c.bf16 (!%p391_p13), %v450_v57, %v449_v56  ;;  %v5927_v61 = vpack.c.bf16 (!%p391_p13), %v452_v60, %v451_v59  ;;  %v453_v62 = vld [vmem:[%s6497_s2 + $0x60] sm:$0xff] (!%p391_p13)  ;;  %v454_v63 = vld [vmem:[%s6497_s2 + $0x68] sm:$0xff] (!%p391_p13)  ;;  %v455_v1 = vld [vmem:[%s6497_s2 + $0x70] sm:$0xff] (!%p391_p13)  ;;  %s5565_s15 = sshll.u32 (!%p391_p13), %s5643_s14, 4  ;;  %s5566_s15 = int_to_ptr.vmem [resolvable:$false] %s5565_s15 }
  0x34   : > { %4647 = vmatpush3.bf16.msk.msra.mxu0 %vm5833_vm2, %v5831_v37  ;;  %4657 = vmatpush3.bf16.msk.msra.mxu1 %vm5833_vm2, %v5831_v37  ;;  %v5939_v0 = vpack.c.bf16 %v454_v63, %v453_v62  ;;  %v456_v2 = vld [vmem:[%s6497_s2 + $0x78] sm:$0xff]  ;;  %v3334_v4 = vld [vmem:[%s5845_s18 + $0x20] sm:$0xff]  ;;  %v3336_v5 = vld [vmem:[%s5845_s18 + $0x30] sm:$0xff]  ;;  %p5563_p1 = pnand %p5562_p0, %p5720_p5  ;;  %s5567_s16 = scalar_lea.vmem %s5566_s15, 1024 }
  0x35   : > { %4659 = vmatprep.subr.bf16.mxu0 %v5857_v43  ;;  %4691 = vmatprep.subr.bf16.mxu1 %v5857_v43  ;;  %v5951_v3 = vpack.c.bf16 %v456_v2, %v455_v1  ;;  %v3335_v6 = vld [vmem:[%s5845_s18 + $0x28] sm:$0xff]  ;;  %v3337_v7 = vld [vmem:[%s5845_s18 + $0x38] sm:$0xff]  ;;  %v6020_v8 = vld [vmem:[%s6498_s3] ss:$0 sm:$0xff]  ;;  %p5568_p3 = scmp.lt.s32.totalorder %s6441_s28, %s5566_s15  ;;  %p5569_p4 = scmp.lt.s32.totalorder %s5567_s16, %s5561_s13 }
  0x36   : > { %v3344_v21 = vld [vmem:[%s5845_s18 + $0x40] sm:$0xff]  ;;  %v3346_v22 = vld [vmem:[%s5845_s18 + $0x50] sm:$0xff]  ;;  %v3345_v23 = vld [vmem:[%s5845_s18 + $0x48] sm:$0xff]  ;;  %p5564_p2 = pneg %p5563_p1 }
  0x37   : > { %3841 = vmatmul.mubr.msk.f32.vlgmr.msra.gmra.mrb[0].mxu0 %vm472_vm3, %v463_v46  ;;  %3852 = vmatmul.mubr.msk.f32.vlgmr.msra.gmra.mrb[0].mxu1 %vm472_vm3, %v465_v47  ;;  %v3347_v24 = vld [vmem:[%s5845_s18 + $0x58] sm:$0xff]  ;;  %v3354_v40 = vld [vmem:[%s5845_s18 + $0x60] sm:$0xff]  ;;  %v3356_v41 = vld [vmem:[%s5845_s18 + $0x70] sm:$0xff]  ;;  %p5570_p6 = por %p5569_p4, %p5568_p3 }
  0x38   : > { %4661 = vmatpush3.bf16.msra.mxu0 %v5857_v43  ;;  %4693 = vmatpush3.bf16.msra.mxu1 %v5857_v43  ;;  %v3355_v42 = vld [vmem:[%s5845_s18 + $0x68] sm:$0xff]  ;;  %v3357_v44 = vld [vmem:[%s5845_s18 + $0x78] sm:$0xff]  ;;  %v3364_v62 = vld [vmem:[%s5845_s18 + $0x80] sm:$0xff] }
  0x39   : > { %4663 = vmatprep.subr.bf16.mxu0 %v5877_v48  ;;  %4695 = vmatprep.subr.bf16.mxu1 %v5877_v48  ;;  %v3366_v63 = vld [vmem:[%s5845_s18 + $0x90] sm:$0xff]  ;;  %v3365_v1 = vld [vmem:[%s5845_s18 + $0x88] sm:$0xff]  ;;  %v3367_v2 = vld [vmem:[%s5845_s18 + $0x98] sm:$0xff]  ;;  %p5571_p7 = pnand %p5570_p6, %p5564_p2 }
  0x3a   : > { %3886 = vmatprep.mubr.f32.mxu0 %v5642_v54  ;;  %3921 = vmatprep.mubr.f32.mxu1 %v5642_v54  ;;  %v3048_v38 = vld [vmem:[%s6499_s4 + $0x8] sm:$0xff] }
  0x3c   : > { %4665 = vmatpush3.bf16.msra.mxu0 %v5877_v48  ;;  %4697 = vmatpush3.bf16.msra.mxu1 %v5877_v48 }
  0x3d   : > { %4667 = vmatprep.subr.bf16.mxu0 %v5891_v51  ;;  %4699 = vmatprep.subr.bf16.mxu1 %v5891_v51 }
  0x40   : > { %4669 = vmatpush3.bf16.msra.mxu0 %v5891_v51  ;;  %4701 = vmatpush3.bf16.msra.mxu1 %v5891_v51 }
  0x41   : > { %4671 = vmatprep.subr.bf16.mxu0 %v5903_v55  ;;  %4703 = vmatprep.subr.bf16.mxu1 %v5903_v55 }
  0x44   : > { %4673 = vmatpush3.bf16.msra.mxu0 %v5903_v55  ;;  %4705 = vmatpush3.bf16.msra.mxu1 %v5903_v55 }
  0x45   : > { %4675 = vmatprep.subr.bf16.mxu0 %v5915_v58  ;;  %4707 = vmatprep.subr.bf16.mxu1 %v5915_v58 }
  0x48   : > { %4677 = vmatpush3.bf16.msra.mxu0 %v5915_v58  ;;  %4709 = vmatpush3.bf16.msra.mxu1 %v5915_v58 }
  0x49   : > { %4679 = vmatprep.subr.bf16.mxu0 %v5927_v61  ;;  %4711 = vmatprep.subr.bf16.mxu1 %v5927_v61 }
  0x4c   : > { %4681 = vmatpush3.bf16.msra.mxu0 %v5927_v61  ;;  %4713 = vmatpush3.bf16.msra.mxu1 %v5927_v61 }
  0x4d   : > { %4683 = vmatprep.subr.bf16.mxu0 %v5939_v0  ;;  %4715 = vmatprep.subr.bf16.mxu1 %v5939_v0 }
  0x50   : > { %4685 = vmatpush3.bf16.msra.mxu0 %v5939_v0  ;;  %4717 = vmatpush3.bf16.msra.mxu1 %v5939_v0 }
  0x51   : > { %4687 = vmatprep.subr.bf16.mxu0 %v5951_v3  ;;  %4719 = vmatprep.subr.bf16.mxu1 %v5951_v3 }
  0x54   : > { %4689 = vmatpush3.bf16.msra.mxu0 %v5951_v3  ;;  %4721 = vmatpush3.bf16.msra.mxu1 %v5951_v3 }
  0x55   : > { %4723 = vmatprep.subr.bf16.mxu0 %v5825_v35  ;;  %4733 = vmatprep.subr.bf16.mxu1 %v5825_v35 }
  0x57   : > { %3887 = vmatmul.mubr.f32.vlgmr.msra.gmra.mrb[0].mxu0 %v5642_v54  ;;  %3922 = vmatmul.mubr.f32.vlgmr.msra.gmra.mrb[0].mxu1 %v5642_v54 }
  0x58   : > { %4725 = vmatpush3.bf16.msra.mxu0 %v5825_v35  ;;  %4735 = vmatpush3.bf16.msra.mxu1 %v5825_v35 }
  0x59   : > { %4728 = vmatprep.subr.msk.bf16.mxu0 %vm5833_vm2, %v5831_v37  ;;  %4738 = vmatprep.subr.msk.bf16.mxu1 %vm5833_vm2, %v5831_v37 }
  0x5a   : > { %3932 = vmatprep.mubr.msk.f32.mxu0 %vm472_vm3, %v3334_v4  ;;  %3943 = vmatprep.mubr.msk.f32.mxu1 %vm472_vm3, %v3336_v5 }
  0x5c   : > { %4731 = vmatpush3.bf16.msk.msra.mxu0 %vm5833_vm2, %v5831_v37  ;;  %4741 = vmatpush3.bf16.msk.msra.mxu1 %vm5833_vm2, %v5831_v37 }
  0x5d   : > { %4743 = vmatprep.subr.bf16.mxu0 %v5857_v43  ;;  %4775 = vmatprep.subr.bf16.mxu1 %v5857_v43 }
  0x5f   : > { %3933 = vmatmul.mubr.msk.f32.vlgmr.msra.gmra.mrb[2].mxu0 %vm472_vm3, %v3335_v6  ;;  %3944 = vmatmul.mubr.msk.f32.vlgmr.msra.gmra.mrb[2].mxu1 %vm472_vm3, %v3337_v7 }
  0x60   : > { %4745 = vmatpush3.bf16.msra.mxu0 %v5857_v43  ;;  %4777 = vmatpush3.bf16.msra.mxu1 %v5857_v43 }
  0x61   : > { %4747 = vmatprep.subr.bf16.mxu0 %v5877_v48  ;;  %4779 = vmatprep.subr.bf16.mxu1 %v5877_v48 }
  0x64   : > { %4749 = vmatpush3.bf16.msra.mxu0 %v5877_v48  ;;  %4781 = vmatpush3.bf16.msra.mxu1 %v5877_v48 }
  0x65   : > { %4751 = vmatprep.subr.bf16.mxu0 %v5891_v51  ;;  %4783 = vmatprep.subr.bf16.mxu1 %v5891_v51 }
  0x68   : > { %4753 = vmatpush3.bf16.msra.mxu0 %v5891_v51  ;;  %4785 = vmatpush3.bf16.msra.mxu1 %v5891_v51 }
  0x69   : > { %4755 = vmatprep.subr.bf16.mxu0 %v5903_v55  ;;  %4787 = vmatprep.subr.bf16.mxu1 %v5903_v55 }
  0x6c   : > { %4757 = vmatpush3.bf16.msra.mxu0 %v5903_v55  ;;  %4789 = vmatpush3.bf16.msra.mxu1 %v5903_v55 }
  0x6d   : > { %4759 = vmatprep.subr.bf16.mxu0 %v5915_v58  ;;  %4791 = vmatprep.subr.bf16.mxu1 %v5915_v58 }
  0x70   : > { %4761 = vmatpush3.bf16.msra.mxu0 %v5915_v58  ;;  %4793 = vmatpush3.bf16.msra.mxu1 %v5915_v58 }
  0x71   : > { %4763 = vmatprep.subr.bf16.mxu0 %v5927_v61  ;;  %4795 = vmatprep.subr.bf16.mxu1 %v5927_v61 }
  0x74   : > { %4765 = vmatpush3.bf16.msra.mxu0 %v5927_v61  ;;  %4797 = vmatpush3.bf16.msra.mxu1 %v5927_v61 }
  0x75   : > { %4767 = vmatprep.subr.bf16.mxu0 %v5939_v0  ;;  %4799 = vmatprep.subr.bf16.mxu1 %v5939_v0 }
  0x78   : > { %4769 = vmatpush3.bf16.msra.mxu0 %v5939_v0  ;;  %4801 = vmatpush3.bf16.msra.mxu1 %v5939_v0 }
  0x79   : > { %4771 = vmatprep.subr.bf16.mxu0 %v5951_v3  ;;  %4803 = vmatprep.subr.bf16.mxu1 %v5951_v3 }
  0x7c   : > { %4773 = vmatpush3.bf16.msra.mxu0 %v5951_v3  ;;  %4805 = vmatpush3.bf16.msra.mxu1 %v5951_v3 }
  0x7d   : > { %4807 = vmatprep.subr.bf16.mxu0 %v5825_v35  ;;  %4817 = vmatprep.subr.bf16.mxu1 %v5825_v35 }
 0x12a   : > { %v3888_v9 = vpop.f32.mrb[0].mxu0  ;;  %v3923_v10 = vpop.f32.mrb[0].mxu1 }
 0x12b   : > { %v5374_v11 = vadd.f32 %v3888_v9, %v6020_v8  ;;  %v705_v12 = vpop.f32.mrb[1].mxu0  ;;  %v780_v13 = vpop.f32.mrb[1].mxu1  ;;  %v5376_v16 = vadd.f32 %v3923_v10, %v6020_v8 }
 0x12c   : > { %v5375_v14 = vadd.f32 %v6020_v8, %v705_v12  ;;  %v5377_v15 = vadd.f32 %v6020_v8, %v780_v13 }
 0x12d   : > { %5497 = vtanh.f32 %v5374_v11 }
 0x12e   : > { %5499 = vtanh.f32 %v5375_v14 }
 0x12f   : > { %5501 = vtanh.f32 %v5377_v15 }
 0x130   : > { %5503 = vtanh.f32 %v5376_v16 }
 0x137   : > { %v5498_v17 = vpop.eup %5497 }
 0x138   : > { %v5500_v18 = vpop.eup %5499 }
 0x139   : > { %v5502_v19 = vpop.eup %5501  ;;  %3978 = vmatprep.mubr.f32.mxu0 %v5500_v18  ;;  %v3376_v18 = vld [vmem:[%s5845_s18 + $0xb0] sm:$0xff] }
 0x13a   : > { %v5504_v20 = vpop.eup %5503  ;;  %4013 = vmatprep.mubr.f32.mxu1 %v5502_v19  ;;  %3979 = vmatmul.mubr.f32.vlgmr.msra.gmra.mrb[2].mxu0 %v5498_v17  ;;  %v3374_v17 = vld [vmem:[%s5845_s18 + $0xa0] sm:$0xff]  ;;  %v3375_v19 = vld [vmem:[%s5845_s18 + $0xa8] sm:$0xff] }
 0x13b   : > { %4014 = vmatmul.mubr.f32.vlgmr.msra.gmra.mrb[2].mxu1 %v5504_v20  ;;  %4809 = vmatpush3.bf16.msra.mxu0 %v5825_v35  ;;  %v3377_v20 = vld [vmem:[%s5845_s18 + $0xb8] sm:$0xff] }
 0x13c   : > { %4819 = vmatpush3.bf16.msra.mxu1 %v5825_v35  ;;  %4812 = vmatprep.subr.msk.bf16.mxu0 %vm5833_vm2, %v5831_v37 }
 0x13d   : > { %4822 = vmatprep.subr.msk.bf16.mxu1 %vm5833_vm2, %v5831_v37  ;;  %4024 = vmatprep.mubr.msk.f32.mxu0 %vm472_vm3, %v3344_v21 }
 0x13e   : > { %4035 = vmatprep.mubr.msk.f32.mxu1 %vm472_vm3, %v3346_v22 }
 0x13f   : > { %4815 = vmatpush3.bf16.msk.msra.mxu0 %vm5833_vm2, %v5831_v37 }
 0x140   : > { %4825 = vmatpush3.bf16.msk.msra.mxu1 %vm5833_vm2, %v5831_v37  ;;  %4827 = vmatprep.subr.bf16.mxu0 %v5857_v43 }
 0x141   : > { %4859 = vmatprep.subr.bf16.mxu1 %v5857_v43 }
 0x142   : > { %4025 = vmatmul.mubr.msk.f32.vlgmr.msra.gmra.mrb[4].mxu0 %vm472_vm3, %v3345_v23 }
 0x143   : > { %4036 = vmatmul.mubr.msk.f32.vlgmr.msra.gmra.mrb[4].mxu1 %vm472_vm3, %v3347_v24  ;;  %4829 = vmatpush3.bf16.msra.mxu0 %v5857_v43 }
 0x144   : > { %4861 = vmatpush3.bf16.msra.mxu1 %v5857_v43  ;;  %4831 = vmatprep.subr.bf16.mxu0 %v5877_v48 }
 0x145   : > { %4863 = vmatprep.subr.bf16.mxu1 %v5877_v48 }
 0x147   : > { %4833 = vmatpush3.bf16.msra.mxu0 %v5877_v48 }
 0x148   : > { %4865 = vmatpush3.bf16.msra.mxu1 %v5877_v48  ;;  %4835 = vmatprep.subr.bf16.mxu0 %v5891_v51 }
 0x149   : > { %4867 = vmatprep.subr.bf16.mxu1 %v5891_v51 }
 0x14b   : > { %4837 = vmatpush3.bf16.msra.mxu0 %v5891_v51 }
 0x14c   : > { %4869 = vmatpush3.bf16.msra.mxu1 %v5891_v51  ;;  %4839 = vmatprep.subr.bf16.mxu0 %v5903_v55 }
 0x14d   : > { %4871 = vmatprep.subr.bf16.mxu1 %v5903_v55 }
 0x14f   : > { %4841 = vmatpush3.bf16.msra.mxu0 %v5903_v55 }
 0x150   : > { %4873 = vmatpush3.bf16.msra.mxu1 %v5903_v55  ;;  %4843 = vmatprep.subr.bf16.mxu0 %v5915_v58 }
 0x151   : > { %4875 = vmatprep.subr.bf16.mxu1 %v5915_v58 }
 0x153   : > { %4845 = vmatpush3.bf16.msra.mxu0 %v5915_v58 }
 0x154   : > { %4877 = vmatpush3.bf16.msra.mxu1 %v5915_v58  ;;  %4847 = vmatprep.subr.bf16.mxu0 %v5927_v61 }
 0x155   : > { %4879 = vmatprep.subr.bf16.mxu1 %v5927_v61 }
 0x157   : > { %4849 = vmatpush3.bf16.msra.mxu0 %v5927_v61 }
 0x158   : > { %4881 = vmatpush3.bf16.msra.mxu1 %v5927_v61  ;;  %4851 = vmatprep.subr.bf16.mxu0 %v5939_v0 }
 0x159   : > { %4883 = vmatprep.subr.bf16.mxu1 %v5939_v0 }
 0x15b   : > { %4853 = vmatpush3.bf16.msra.mxu0 %v5939_v0 }
 0x15c   : > { %4885 = vmatpush3.bf16.msra.mxu1 %v5939_v0  ;;  %4855 = vmatprep.subr.bf16.mxu0 %v5951_v3 }
 0x15d   : > { %4887 = vmatprep.subr.bf16.mxu1 %v5951_v3 }
 0x15f   : > { %4857 = vmatpush3.bf16.msra.mxu0 %v5951_v3 }
 0x160   : > { %4889 = vmatpush3.bf16.msra.mxu1 %v5951_v3  ;;  %4891 = vmatprep.subr.bf16.mxu0 %v5825_v35 }
 0x161   : > { %4901 = vmatprep.subr.bf16.mxu1 %v5825_v35 }
 0x20d   : > { %v3980_v25 = vpop.f32.mrb[2].mxu0 }
 0x20e   : > { %v5378_v26 = vadd.f32 %v3980_v25, %v6020_v8  ;;  %v4015_v27 = vpop.f32.mrb[2].mxu1  ;;  %v1026_v28 = vpop.f32.mrb[3].mxu0 }
 0x20f   : > { %v5379_v29 = vadd.f32 %v6020_v8, %v1026_v28  ;;  %v1101_v30 = vpop.f32.mrb[3].mxu1  ;;  %v5380_v31 = vadd.f32 %v4015_v27, %v6020_v8 }
 0x210   : > { %v5381_v32 = vadd.f32 %v6020_v8, %v1101_v30  ;;  %5505 = vtanh.f32 %v5378_v26 }
 0x211   : > { %5507 = vtanh.f32 %v5379_v29 }
 0x212   : > { %5509 = vtanh.f32 %v5381_v32 }
 0x213   : > { %5511 = vtanh.f32 %v5380_v31 }
 0x21a   : > { %v5506_v33 = vpop.eup %5505 }
 0x21b   : > { %v5508_v34 = vpop.eup %5507 }
 0x21c   : > { %v5510_v36 = vpop.eup %5509  ;;  %4070 = vmatprep.mubr.f32.mxu0 %v5508_v34  ;;  %v3386_v34 = vld [vmem:[%s5845_s18 + $0xd0] sm:$0xff] }
 0x21d   : > { %v5512_v39 = vpop.eup %5511  ;;  %4105 = vmatprep.mubr.f32.mxu1 %v5510_v36  ;;  %4071 = vmatmul.mubr.f32.vlgmr.msra.gmra.mrb[4].mxu0 %v5506_v33  ;;  %v3384_v33 = vld [vmem:[%s5845_s18 + $0xc0] sm:$0xff]  ;;  %v3385_v36 = vld [vmem:[%s5845_s18 + $0xc8] sm:$0xff] }
 0x21e   : > { %4106 = vmatmul.mubr.f32.vlgmr.msra.gmra.mrb[4].mxu1 %v5512_v39  ;;  %4893 = vmatpush3.bf16.msra.mxu0 %v5825_v35  ;;  %v3387_v39 = vld [vmem:[%s5845_s18 + $0xd8] sm:$0xff] }
 0x21f   : > { %4903 = vmatpush3.bf16.msra.mxu1 %v5825_v35  ;;  %4896 = vmatprep.subr.msk.bf16.mxu0 %vm5833_vm2, %v5831_v37 }
 0x220   : > { %4906 = vmatprep.subr.msk.bf16.mxu1 %vm5833_vm2, %v5831_v37  ;;  %4116 = vmatprep.mubr.msk.f32.mxu0 %vm472_vm3, %v3354_v40 }
 0x221   : > { %4127 = vmatprep.mubr.msk.f32.mxu1 %vm472_vm3, %v3356_v41 }
 0x222   : > { %4899 = vmatpush3.bf16.msk.msra.mxu0 %vm5833_vm2, %v5831_v37 }
 0x223   : > { %4909 = vmatpush3.bf16.msk.msra.mxu1 %vm5833_vm2, %v5831_v37  ;;  %4911 = vmatprep.subr.bf16.mxu0 %v5857_v43 }
 0x224   : > { %4943 = vmatprep.subr.bf16.mxu1 %v5857_v43 }
 0x225   : > { %4117 = vmatmul.mubr.msk.f32.vlgmr.msra.gmra.mrb[6].mxu0 %vm472_vm3, %v3355_v42 }
 0x226   : > { %4128 = vmatmul.mubr.msk.f32.vlgmr.msra.gmra.mrb[6].mxu1 %vm472_vm3, %v3357_v44  ;;  %4913 = vmatpush3.bf16.msra.mxu0 %v5857_v43 }
 0x227   : > { %4945 = vmatpush3.bf16.msra.mxu1 %v5857_v43  ;;  %4915 = vmatprep.subr.bf16.mxu0 %v5877_v48 }
 0x228   : > { %4947 = vmatprep.subr.bf16.mxu1 %v5877_v48 }
 0x22a   : > { %4917 = vmatpush3.bf16.msra.mxu0 %v5877_v48 }
 0x22b   : > { %4949 = vmatpush3.bf16.msra.mxu1 %v5877_v48  ;;  %4919 = vmatprep.subr.bf16.mxu0 %v5891_v51 }
 0x22c   : > { %4951 = vmatprep.subr.bf16.mxu1 %v5891_v51 }
 0x22e   : > { %4921 = vmatpush3.bf16.msra.mxu0 %v5891_v51 }
 0x22f   : > { %4953 = vmatpush3.bf16.msra.mxu1 %v5891_v51  ;;  %4923 = vmatprep.subr.bf16.mxu0 %v5903_v55 }
 0x230   : > { %4955 = vmatprep.subr.bf16.mxu1 %v5903_v55 }
 0x232   : > { %4925 = vmatpush3.bf16.msra.mxu0 %v5903_v55 }
 0x233   : > { %4957 = vmatpush3.bf16.msra.mxu1 %v5903_v55  ;;  %4927 = vmatprep.subr.bf16.mxu0 %v5915_v58 }
 0x234   : > { %4959 = vmatprep.subr.bf16.mxu1 %v5915_v58 }
 0x236   : > { %4929 = vmatpush3.bf16.msra.mxu0 %v5915_v58 }
 0x237   : > { %4961 = vmatpush3.bf16.msra.mxu1 %v5915_v58  ;;  %4931 = vmatprep.subr.bf16.mxu0 %v5927_v61 }
 0x238   : > { %4963 = vmatprep.subr.bf16.mxu1 %v5927_v61 }
 0x23a   : > { %4933 = vmatpush3.bf16.msra.mxu0 %v5927_v61 }
 0x23b   : > { %4965 = vmatpush3.bf16.msra.mxu1 %v5927_v61  ;;  %4935 = vmatprep.subr.bf16.mxu0 %v5939_v0 }
 0x23c   : > { %4967 = vmatprep.subr.bf16.mxu1 %v5939_v0 }
 0x23e   : > { %4937 = vmatpush3.bf16.msra.mxu0 %v5939_v0 }
 0x23f   : > { %4969 = vmatpush3.bf16.msra.mxu1 %v5939_v0  ;;  %4939 = vmatprep.subr.bf16.mxu0 %v5951_v3 }
 0x240   : > { %4971 = vmatprep.subr.bf16.mxu1 %v5951_v3 }
 0x242   : > { %4941 = vmatpush3.bf16.msra.mxu0 %v5951_v3 }
 0x243   : > { %4973 = vmatpush3.bf16.msra.mxu1 %v5951_v3  ;;  %4975 = vmatprep.subr.bf16.mxu0 %v5825_v35 }
 0x244   : > { %4985 = vmatprep.subr.bf16.mxu1 %v5825_v35 }
 0x2f0   : > { %v4072_v45 = vpop.f32.mrb[4].mxu0 }
 0x2f1   : > { %v5382_v46 = vadd.f32 %v4072_v45, %v6020_v8  ;;  %v4107_v47 = vpop.f32.mrb[4].mxu1  ;;  %v1347_v49 = vpop.f32.mrb[5].mxu0 }
 0x2f2   : > { %v5383_v50 = vadd.f32 %v6020_v8, %v1347_v49  ;;  %v1422_v52 = vpop.f32.mrb[5].mxu1  ;;  %v5384_v53 = vadd.f32 %v4107_v47, %v6020_v8 }
 0x2f3   : > { %v5385_v54 = vadd.f32 %v6020_v8, %v1422_v52  ;;  %5513 = vtanh.f32 %v5382_v46 }
 0x2f4   : > { %5515 = vtanh.f32 %v5383_v50 }
 0x2f5   : > { %5517 = vtanh.f32 %v5385_v54 }
 0x2f6   : > { %5519 = vtanh.f32 %v5384_v53 }
 0x2fd   : > { %v5514_v56 = vpop.eup %5513 }
 0x2fe   : > { %v5516_v57 = vpop.eup %5515 }
 0x2ff   : > { %v5518_v59 = vpop.eup %5517  ;;  %4162 = vmatprep.mubr.f32.mxu0 %v5516_v57  ;;  %v3396_v57 = vld [vmem:[%s5845_s18 + $0xf0] sm:$0xff] }
 0x300   : > { %v5520_v60 = vpop.eup %5519  ;;  %4197 = vmatprep.mubr.f32.mxu1 %v5518_v59  ;;  %4163 = vmatmul.mubr.f32.vlgmr.msra.gmra.mrb[6].mxu0 %v5514_v56  ;;  %v3394_v56 = vld [vmem:[%s5845_s18 + $0xe0] sm:$0xff]  ;;  %v3395_v59 = vld [vmem:[%s5845_s18 + $0xe8] sm:$0xff] }
 0x301   : > { %4198 = vmatmul.mubr.f32.vlgmr.msra.gmra.mrb[6].mxu1 %v5520_v60  ;;  %4977 = vmatpush3.bf16.msra.mxu0 %v5825_v35 }
 0x302   : > { %4987 = vmatpush3.bf16.msra.mxu1 %v5825_v35  ;;  %4980 = vmatprep.subr.msk.bf16.mxu0 %vm5833_vm2, %v5831_v37 }
 0x303   : > { %4990 = vmatprep.subr.msk.bf16.mxu1 %vm5833_vm2, %v5831_v37  ;;  %4208 = vmatprep.mubr.msk.f32.mxu0 %vm472_vm3, %v3364_v62  ;;  %v3049_v62 = vld [vmem:[%s6499_s4 + $0x10] sm:$0xff] }
 0x304   : > { %4219 = vmatprep.mubr.msk.f32.mxu1 %vm472_vm3, %v3366_v63  ;;  %v3050_v63 = vld [vmem:[%s6499_s4 + $0x18] sm:$0xff] }
 0x305   : > { %4983 = vmatpush3.bf16.msk.msra.mxu0 %vm5833_vm2, %v5831_v37 }
 0x306   : > { %4993 = vmatpush3.bf16.msk.msra.mxu1 %vm5833_vm2, %v5831_v37  ;;  %4995 = vmatprep.subr.bf16.mxu0 %v5857_v43 }
 0x307   : > { %5027 = vmatprep.subr.bf16.mxu1 %v5857_v43 }
 0x308   : > { %4209 = vmatmul.mubr.msk.f32.vlgmr.msra.gmra.mrb[8].mxu0 %vm472_vm3, %v3365_v1 }
 0x309   : > { %4220 = vmatmul.mubr.msk.f32.vlgmr.msra.gmra.mrb[8].mxu1 %vm472_vm3, %v3367_v2  ;;  %4997 = vmatpush3.bf16.msra.mxu0 %v5857_v43 }
 0x30a   : > { %5029 = vmatpush3.bf16.msra.mxu1 %v5857_v43  ;;  %4999 = vmatprep.subr.bf16.mxu0 %v5877_v48 }
 0x30b   : > { %5031 = vmatprep.subr.bf16.mxu1 %v5877_v48 }
 0x30d   : > { %5001 = vmatpush3.bf16.msra.mxu0 %v5877_v48 }
 0x30e   : > { %5033 = vmatpush3.bf16.msra.mxu1 %v5877_v48  ;;  %5003 = vmatprep.subr.bf16.mxu0 %v5891_v51 }
 0x30f   : > { %5035 = vmatprep.subr.bf16.mxu1 %v5891_v51 }
 0x311   : > { %5005 = vmatpush3.bf16.msra.mxu0 %v5891_v51 }
 0x312   : > { %5037 = vmatpush3.bf16.msra.mxu1 %v5891_v51  ;;  %5007 = vmatprep.subr.bf16.mxu0 %v5903_v55 }
 0x313   : > { %5039 = vmatprep.subr.bf16.mxu1 %v5903_v55 }
 0x315   : > { %5009 = vmatpush3.bf16.msra.mxu0 %v5903_v55 }
 0x316   : > { %5041 = vmatpush3.bf16.msra.mxu1 %v5903_v55  ;;  %5011 = vmatprep.subr.bf16.mxu0 %v5915_v58 }
 0x317   : > { %5043 = vmatprep.subr.bf16.mxu1 %v5915_v58 }
 0x319   : > { %5013 = vmatpush3.bf16.msra.mxu0 %v5915_v58 }
 0x31a   : > { %5045 = vmatpush3.bf16.msra.mxu1 %v5915_v58  ;;  %5015 = vmatprep.subr.bf16.mxu0 %v5927_v61 }
 0x31b   : > { %5047 = vmatprep.subr.bf16.mxu1 %v5927_v61 }
 0x31d   : > { %5017 = vmatpush3.bf16.msra.mxu0 %v5927_v61 }
 0x31e   : > { %5049 = vmatpush3.bf16.msra.mxu1 %v5927_v61  ;;  %5019 = vmatprep.subr.bf16.mxu0 %v5939_v0 }
 0x31f   : > { %5051 = vmatprep.subr.bf16.mxu1 %v5939_v0 }
 0x321   : > { %5021 = vmatpush3.bf16.msra.mxu0 %v5939_v0 }
 0x322   : > { %5053 = vmatpush3.bf16.msra.mxu1 %v5939_v0  ;;  %5023 = vmatprep.subr.bf16.mxu0 %v5951_v3 }
 0x323   : > { %5055 = vmatprep.subr.bf16.mxu1 %v5951_v3 }
 0x325   : > { %5025 = vmatpush3.bf16.msra.mxu0 %v5951_v3 }
 0x326   : > { %5057 = vmatpush3.bf16.msra.mxu1 %v5951_v3  ;;  %5059 = vmatprep.subr.bf16.mxu0 %v5825_v35 }
 0x327   : > { %5069 = vmatprep.subr.bf16.mxu1 %v5825_v35 }
 0x3d3   : > { %v4164_v4 = vpop.f32.mrb[6].mxu0 }
 0x3d4   : > { %v5386_v5 = vadd.f32 %v4164_v4, %v6020_v8  ;;  %v4199_v6 = vpop.f32.mrb[6].mxu1  ;;  %v1668_v7 = vpop.f32.mrb[7].mxu0  ;;  %v5314_v4 = vpack.c.bf16 %v3050_v63, %v3049_v62 }
 0x3d5   : > { %v5387_v9 = vadd.f32 %v6020_v8, %v1668_v7  ;;  %v1743_v10 = vpop.f32.mrb[7].mxu1  ;;  %v5388_v11 = vadd.f32 %v4199_v6, %v6020_v8  ;;  %v3051_v6 = vld [vmem:[%s6499_s4 + $0x20] sm:$0xff]  ;;  %v3052_v7 = vld [vmem:[%s6499_s4 + $0x28] sm:$0xff] }
 0x3d6   : > { %v5389_v12 = vadd.f32 %v6020_v8, %v1743_v10  ;;  %5521 = vtanh.f32 %v5386_v5  ;;  %v5318_v10 = vpack.c.bf16 %v3052_v7, %v3051_v6 }
 0x3d7   : > { %5523 = vtanh.f32 %v5387_v9 }
 0x3d8   : > { %5525 = vtanh.f32 %v5389_v12  ;;  %v3054_v12 = vld [vmem:[%s6499_s4 + $0x38] sm:$0xff] }
 0x3d9   : > { %5527 = vtanh.f32 %v5388_v11  ;;  %v3053_v11 = vld [vmem:[%s6499_s4 + $0x30] sm:$0xff] }
 0x3e0   : > { %v5522_v13 = vpop.eup %5521 }
 0x3e1   : > { %v5524_v14 = vpop.eup %5523 }
 0x3e2   : > { %v5526_v15 = vpop.eup %5525  ;;  %4254 = vmatprep.mubr.f32.mxu0 %v5524_v14  ;;  %v3055_v14 = vld [vmem:[%s6499_s4 + $0x40] sm:$0xff] }
 0x3e3   : > { %v5528_v16 = vpop.eup %5527  ;;  %4289 = vmatprep.mubr.f32.mxu1 %v5526_v15  ;;  %4255 = vmatmul.mubr.f32.vlgmr.msra.gmra.mrb[8].mxu0 %v5522_v13  ;;  %v5322_v13 = vpack.c.bf16 %v3054_v12, %v3053_v11  ;;  %v3056_v15 = vld [vmem:[%s6499_s4 + $0x48] sm:$0xff] }
 0x3e4   : > { %4290 = vmatmul.mubr.f32.vlgmr.msra.gmra.mrb[8].mxu1 %v5528_v16  ;;  %5061 = vmatpush3.bf16.msra.mxu0 %v5825_v35  ;;  %v5326_v16 = vpack.c.bf16 %v3056_v15, %v3055_v14 }
 0x3e5   : > { %5071 = vmatpush3.bf16.msra.mxu1 %v5825_v35  ;;  %5064 = vmatprep.subr.msk.bf16.mxu0 %vm5833_vm2, %v5831_v37 }
 0x3e6   : > { %5074 = vmatprep.subr.msk.bf16.mxu1 %vm5833_vm2, %v5831_v37  ;;  %4300 = vmatprep.mubr.msk.f32.mxu0 %vm472_vm3, %v3374_v17  ;;  %v3057_v17 = vld [vmem:[%s6499_s4 + $0x50] sm:$0xff] }
 0x3e7   : > { %4311 = vmatprep.mubr.msk.f32.mxu1 %vm472_vm3, %v3376_v18  ;;  %v3058_v18 = vld [vmem:[%s6499_s4 + $0x58] sm:$0xff] }
 0x3e8   : > { %5067 = vmatpush3.bf16.msk.msra.mxu0 %vm5833_vm2, %v5831_v37 }
 0x3e9   : > { %5077 = vmatpush3.bf16.msk.msra.mxu1 %vm5833_vm2, %v5831_v37  ;;  %5079 = vmatprep.subr.bf16.mxu0 %v5857_v43 }
 0x3ea   : > { %5111 = vmatprep.subr.bf16.mxu1 %v5857_v43 }
 0x3eb   : > { %4301 = vmatmul.mubr.msk.f32.vlgmr.msra.gmra.mrb[10].mxu0 %vm472_vm3, %v3375_v19  ;;  %v5330_v19 = vpack.c.bf16 %v3058_v18, %v3057_v17 }
 0x3ec   : > { %4312 = vmatmul.mubr.msk.f32.vlgmr.msra.gmra.mrb[10].mxu1 %vm472_vm3, %v3377_v20  ;;  %5081 = vmatpush3.bf16.msra.mxu0 %v5857_v43  ;;  %v3059_v20 = vld [vmem:[%s6499_s4 + $0x60] sm:$0xff] }
 0x3ed   : > { %5113 = vmatpush3.bf16.msra.mxu1 %v5857_v43  ;;  %5083 = vmatprep.subr.bf16.mxu0 %v5877_v48 }
 0x3ee   : > { %5115 = vmatprep.subr.bf16.mxu1 %v5877_v48 }
 0x3f0   : > { %5085 = vmatpush3.bf16.msra.mxu0 %v5877_v48 }
 0x3f1   : > { %5117 = vmatpush3.bf16.msra.mxu1 %v5877_v48  ;;  %5087 = vmatprep.subr.bf16.mxu0 %v5891_v51 }
 0x3f2   : > { %5119 = vmatprep.subr.bf16.mxu1 %v5891_v51 }
 0x3f4   : > { %5089 = vmatpush3.bf16.msra.mxu0 %v5891_v51 }
 0x3f5   : > { %5121 = vmatpush3.bf16.msra.mxu1 %v5891_v51  ;;  %5091 = vmatprep.subr.bf16.mxu0 %v5903_v55 }
 0x3f6   : > { %5123 = vmatprep.subr.bf16.mxu1 %v5903_v55 }
 0x3f8   : > { %5093 = vmatpush3.bf16.msra.mxu0 %v5903_v55 }
 0x3f9   : > { %5125 = vmatpush3.bf16.msra.mxu1 %v5903_v55  ;;  %5095 = vmatprep.subr.bf16.mxu0 %v5915_v58 }
 0x3fa   : > { %5127 = vmatprep.subr.bf16.mxu1 %v5915_v58 }
 0x3fc   : > { %5097 = vmatpush3.bf16.msra.mxu0 %v5915_v58 }
 0x3fd   : > { %5129 = vmatpush3.bf16.msra.mxu1 %v5915_v58  ;;  %5099 = vmatprep.subr.bf16.mxu0 %v5927_v61 }
 0x3fe   : > { %5131 = vmatprep.subr.bf16.mxu1 %v5927_v61 }
 0x400   : > { %5101 = vmatpush3.bf16.msra.mxu0 %v5927_v61 }
 0x401   : > { %5133 = vmatpush3.bf16.msra.mxu1 %v5927_v61  ;;  %5103 = vmatprep.subr.bf16.mxu0 %v5939_v0 }
 0x402   : > { %5135 = vmatprep.subr.bf16.mxu1 %v5939_v0 }
 0x404   : > { %5105 = vmatpush3.bf16.msra.mxu0 %v5939_v0 }
 0x405   : > { %5137 = vmatpush3.bf16.msra.mxu1 %v5939_v0  ;;  %5107 = vmatprep.subr.bf16.mxu0 %v5951_v3 }
 0x406   : > { %5139 = vmatprep.subr.bf16.mxu1 %v5951_v3 }
 0x408   : > { %5109 = vmatpush3.bf16.msra.mxu0 %v5951_v3 }
 0x409   : > { %5141 = vmatpush3.bf16.msra.mxu1 %v5951_v3  ;;  %5143 = vmatprep.subr.bf16.mxu0 %v5825_v35 }
 0x40a   : > { %5153 = vmatprep.subr.bf16.mxu1 %v5825_v35 }
 0x4b6   : > { %v4256_v21 = vpop.f32.mrb[8].mxu0 }
 0x4b7   : > { %v5390_v22 = vadd.f32 %v4256_v21, %v6020_v8  ;;  %v4291_v23 = vpop.f32.mrb[8].mxu1  ;;  %v1989_v24 = vpop.f32.mrb[9].mxu0  ;;  %v3060_v21 = vld [vmem:[%s6499_s4 + $0x68] sm:$0xff] }
 0x4b8   : > { %v5391_v25 = vadd.f32 %v6020_v8, %v1989_v24  ;;  %v2064_v26 = vpop.f32.mrb[9].mxu1  ;;  %v5392_v27 = vadd.f32 %v4291_v23, %v6020_v8  ;;  %v5334_v23 = vpack.c.bf16 %v3060_v21, %v3059_v20  ;;  %v3062_v24 = vld [vmem:[%s6499_s4 + $0x78] sm:$0xff] }
 0x4b9   : > { %v5393_v28 = vadd.f32 %v6020_v8, %v2064_v26  ;;  %5529 = vtanh.f32 %v5390_v22  ;;  %v3061_v22 = vld [vmem:[%s6499_s4 + $0x70] sm:$0xff] }
 0x4ba   : > { %5531 = vtanh.f32 %v5391_v25  ;;  %v5338_v25 = vpack.c.bf16 %v3062_v24, %v3061_v22 }
 0x4bb   : > { %5533 = vtanh.f32 %v5393_v28 }
 0x4bc   : > { %5535 = vtanh.f32 %v5392_v27 }
 0x4c3   : > { %v5530_v29 = vpop.eup %5529 }
 0x4c4   : > { %v5532_v30 = vpop.eup %5531 }
 0x4c5   : > { %v5534_v31 = vpop.eup %5533  ;;  %4346 = vmatprep.mubr.f32.mxu0 %v5532_v30 }
 0x4c6   : > { %v5536_v32 = vpop.eup %5535  ;;  %4381 = vmatprep.mubr.f32.mxu1 %v5534_v31  ;;  %4347 = vmatmul.mubr.f32.vlgmr.msra.gmra.mrb[10].mxu0 %v5530_v29 }
 0x4c7   : > { %4382 = vmatmul.mubr.f32.vlgmr.msra.gmra.mrb[10].mxu1 %v5536_v32  ;;  %5145 = vmatpush3.bf16.msra.mxu0 %v5825_v35 }
 0x4c8   : > { %5155 = vmatpush3.bf16.msra.mxu1 %v5825_v35  ;;  %5148 = vmatprep.subr.msk.bf16.mxu0 %vm5833_vm2, %v5831_v37 }
 0x4c9   : > { %5158 = vmatprep.subr.msk.bf16.mxu1 %vm5833_vm2, %v5831_v37  ;;  %4392 = vmatprep.mubr.msk.f32.mxu0 %vm472_vm3, %v3384_v33 }
 0x4ca   : > { %4403 = vmatprep.mubr.msk.f32.mxu1 %vm472_vm3, %v3386_v34 }
 0x4cb   : > { %5151 = vmatpush3.bf16.msk.msra.mxu0 %vm5833_vm2, %v5831_v37 }
 0x4cc   : > { %5161 = vmatpush3.bf16.msk.msra.mxu1 %vm5833_vm2, %v5831_v37  ;;  %5163 = vmatprep.subr.bf16.mxu0 %v5857_v43 }
 0x4cd   : > { %5195 = vmatprep.subr.bf16.mxu1 %v5857_v43 }
 0x4ce   : > { %4393 = vmatmul.mubr.msk.f32.vlgmr.msra.gmra.mrb[12].mxu0 %vm472_vm3, %v3385_v36 }
 0x4cf   : > { %4404 = vmatmul.mubr.msk.f32.vlgmr.msra.gmra.mrb[12].mxu1 %vm472_vm3, %v3387_v39  ;;  %5165 = vmatpush3.bf16.msra.mxu0 %v5857_v43 }
 0x4d0   : > { %5197 = vmatpush3.bf16.msra.mxu1 %v5857_v43  ;;  %5167 = vmatprep.subr.bf16.mxu0 %v5877_v48 }
 0x4d1   : > { %5199 = vmatprep.subr.bf16.mxu1 %v5877_v48 }
 0x4d3   : > { %5169 = vmatpush3.bf16.msra.mxu0 %v5877_v48 }
 0x4d4   : > { %5201 = vmatpush3.bf16.msra.mxu1 %v5877_v48  ;;  %5171 = vmatprep.subr.bf16.mxu0 %v5891_v51 }
 0x4d5   : > { %5203 = vmatprep.subr.bf16.mxu1 %v5891_v51 }
 0x4d7   : > { %5173 = vmatpush3.bf16.msra.mxu0 %v5891_v51 }
 0x4d8   : > { %5205 = vmatpush3.bf16.msra.mxu1 %v5891_v51  ;;  %5175 = vmatprep.subr.bf16.mxu0 %v5903_v55 }
 0x4d9   : > { %5207 = vmatprep.subr.bf16.mxu1 %v5903_v55 }
 0x4db   : > { %5177 = vmatpush3.bf16.msra.mxu0 %v5903_v55 }
 0x4dc   : > { %5209 = vmatpush3.bf16.msra.mxu1 %v5903_v55  ;;  %5179 = vmatprep.subr.bf16.mxu0 %v5915_v58 }
 0x4dd   : > { %5211 = vmatprep.subr.bf16.mxu1 %v5915_v58 }
 0x4df   : > { %5181 = vmatpush3.bf16.msra.mxu0 %v5915_v58 }
 0x4e0   : > { %5213 = vmatpush3.bf16.msra.mxu1 %v5915_v58  ;;  %5183 = vmatprep.subr.bf16.mxu0 %v5927_v61 }
 0x4e1   : > { %5215 = vmatprep.subr.bf16.mxu1 %v5927_v61 }
 0x4e3   : > { %5185 = vmatpush3.bf16.msra.mxu0 %v5927_v61 }
 0x4e4   : > { %5217 = vmatpush3.bf16.msra.mxu1 %v5927_v61  ;;  %5187 = vmatprep.subr.bf16.mxu0 %v5939_v0 }
 0x4e5   : > { %5219 = vmatprep.subr.bf16.mxu1 %v5939_v0 }
 0x4e7   : > { %5189 = vmatpush3.bf16.msra.mxu0 %v5939_v0 }
 0x4e8   : > { %5221 = vmatpush3.bf16.msra.mxu1 %v5939_v0  ;;  %5191 = vmatprep.subr.bf16.mxu0 %v5951_v3 }
 0x4e9   : > { %5223 = vmatprep.subr.bf16.mxu1 %v5951_v3 }
 0x4eb   : > { %5193 = vmatpush3.bf16.msra.mxu0 %v5951_v3 }
 0x4ec   : > { %5225 = vmatpush3.bf16.msra.mxu1 %v5951_v3  ;;  %5227 = vmatprep.subr.bf16.mxu0 %v5825_v35 }
 0x4ed   : > { %5237 = vmatprep.subr.bf16.mxu1 %v5825_v35 }
 0x599   : > { %v4348_v40 = vpop.f32.mrb[10].mxu0 }
 0x59a   : > { %v5394_v41 = vadd.f32 %v4348_v40, %v6020_v8  ;;  %v4383_v42 = vpop.f32.mrb[10].mxu1  ;;  %v2310_v44 = vpop.f32.mrb[11].mxu0 }
 0x59b   : > { %v5395_v45 = vadd.f32 %v6020_v8, %v2310_v44  ;;  %v2385_v46 = vpop.f32.mrb[11].mxu1  ;;  %v5396_v47 = vadd.f32 %v4383_v42, %v6020_v8 }
 0x59c   : > { %v5397_v49 = vadd.f32 %v6020_v8, %v2385_v46  ;;  %5537 = vtanh.f32 %v5394_v41  ;;  %v3404_v41 = vld [vmem:[%s6500_s5] ss:$0 sm:$0xff] }
 0x59d   : > { %5539 = vtanh.f32 %v5395_v45 }
 0x59e   : > { %5541 = vtanh.f32 %v5397_v49 }
 0x59f   : > { %5543 = vtanh.f32 %v5396_v47 }
 0x5a6   : > { %v5538_v50 = vpop.eup %5537 }
 0x5a7   : > { %v5540_v52 = vpop.eup %5539 }
 0x5a8   : > { %v5542_v53 = vpop.eup %5541  ;;  %4438 = vmatprep.mubr.f32.mxu0 %v5540_v52 }
 0x5a9   : > { %v5544_v54 = vpop.eup %5543  ;;  %4473 = vmatprep.mubr.f32.mxu1 %v5542_v53  ;;  %4439 = vmatmul.mubr.f32.vlgmr.msra.gmra.mrb[12].mxu0 %v5538_v50 }
 0x5aa   : > { %4474 = vmatmul.mubr.f32.vlgmr.msra.gmra.mrb[12].mxu1 %v5544_v54  ;;  %5229 = vmatpush3.bf16.msra.mxu0 %v5825_v35 }
 0x5ab   : > { %5239 = vmatpush3.bf16.msra.mxu1 %v5825_v35  ;;  %5232 = vmatprep.subr.msk.bf16.mxu0 %vm5833_vm2, %v5831_v37  ;;  %v3397_v35 = vld [vmem:[%s5845_s18 + $0xf8] sm:$0xff] }
 0x5ac   : > { %5242 = vmatprep.subr.msk.bf16.mxu1 %vm5833_vm2, %v5831_v37  ;;  %4484 = vmatprep.mubr.msk.f32.mxu0 %vm472_vm3, %v3394_v56 }
 0x5ad   : > { %4495 = vmatprep.mubr.msk.f32.mxu1 %vm472_vm3, %v3396_v57 }
 0x5ae   : > { %5235 = vmatpush3.bf16.msk.msra.mxu0 %vm5833_vm2, %v5831_v37 }
 0x5af   : > { %5245 = vmatpush3.bf16.msk.msra.mxu1 %vm5833_vm2, %v5831_v37  ;;  %5247 = vmatprep.subr.bf16.mxu0 %v5857_v43  ;;  %v3047_v37 = vld [vmem:[%s6499_s4] sm:$0xff] }
 0x5b0   : > { %5279 = vmatprep.subr.bf16.mxu1 %v5857_v43 }
 0x5b1   : > { %4485 = vmatmul.mubr.msk.f32.vlgmr.msra.gmra.mrb[14].mxu0 %vm472_vm3, %v3395_v59 }
 0x5b2   : > { %4496 = vmatmul.mubr.msk.f32.vlgmr.msra.gmra.mrb[14].mxu1 %vm472_vm3, %v3397_v35  ;;  %5249 = vmatpush3.bf16.msra.mxu0 %v5857_v43 }
 0x5b3   : > { %5281 = vmatpush3.bf16.msra.mxu1 %v5857_v43  ;;  %5251 = vmatprep.subr.bf16.mxu0 %v5877_v48  ;;  %v5310_v43 = vpack.c.bf16 %v3048_v38, %v3047_v37 }
 0x5b4   : > { %5283 = vmatprep.subr.bf16.mxu1 %v5877_v48 }
 0x5b6   : > { %5253 = vmatpush3.bf16.msra.mxu0 %v5877_v48 }
 0x5b7   : > { %5285 = vmatpush3.bf16.msra.mxu1 %v5877_v48  ;;  %5255 = vmatprep.subr.bf16.mxu0 %v5891_v51 }
 0x5b8   : > { %5287 = vmatprep.subr.bf16.mxu1 %v5891_v51 }
 0x5ba   : > { %5257 = vmatpush3.bf16.msra.mxu0 %v5891_v51 }
 0x5bb   : > { %5289 = vmatpush3.bf16.msra.mxu1 %v5891_v51  ;;  %5259 = vmatprep.subr.bf16.mxu0 %v5903_v55 }
 0x5bc   : > { %5291 = vmatprep.subr.bf16.mxu1 %v5903_v55 }
 0x5be   : > { %5261 = vmatpush3.bf16.msra.mxu0 %v5903_v55 }
 0x5bf   : > { %5293 = vmatpush3.bf16.msra.mxu1 %v5903_v55  ;;  %5263 = vmatprep.subr.bf16.mxu0 %v5915_v58 }
 0x5c0   : > { %5295 = vmatprep.subr.bf16.mxu1 %v5915_v58 }
 0x5c2   : > { %5265 = vmatpush3.bf16.msra.mxu0 %v5915_v58 }
 0x5c3   : > { %5297 = vmatpush3.bf16.msra.mxu1 %v5915_v58  ;;  %5267 = vmatprep.subr.bf16.mxu0 %v5927_v61 }
 0x5c4   : > { %5299 = vmatprep.subr.bf16.mxu1 %v5927_v61 }
 0x5c6   : > { %5269 = vmatpush3.bf16.msra.mxu0 %v5927_v61 }
 0x5c7   : > { %5301 = vmatpush3.bf16.msra.mxu1 %v5927_v61  ;;  %5271 = vmatprep.subr.bf16.mxu0 %v5939_v0 }
 0x5c8   : > { %5303 = vmatprep.subr.bf16.mxu1 %v5939_v0 }
 0x5ca   : > { %5273 = vmatpush3.bf16.msra.mxu0 %v5939_v0 }
 0x5cb   : > { %5305 = vmatpush3.bf16.msra.mxu1 %v5939_v0  ;;  %5275 = vmatprep.subr.bf16.mxu0 %v5951_v3 }
 0x5cc   : > { %5307 = vmatprep.subr.bf16.mxu1 %v5951_v3 }
 0x5ce   : > { %5277 = vmatpush3.bf16.msra.mxu0 %v5951_v3 }
 0x5cf   : > { %5309 = vmatpush3.bf16.msra.mxu1 %v5951_v3  ;;  %5311 = vmatprep.subr.bf16.mxu0 %v5310_v43 }
 0x5d0   : > { %5343 = vmatprep.subr.bf16.mxu1 %v5310_v43 }
 0x67c   : > { %v4440_v48 = vpop.f32.mrb[12].mxu0 }
 0x67d   : > { %v5398_v51 = vadd.f32 %v4440_v48, %v6020_v8  ;;  %v4475_v55 = vpop.f32.mrb[12].mxu1  ;;  %v2631_v58 = vpop.f32.mrb[13].mxu0 }
 0x67e   : > { %v5399_v61 = vadd.f32 %v6020_v8, %v2631_v58  ;;  %v2706_v0 = vpop.f32.mrb[13].mxu1  ;;  %v5400_v3 = vadd.f32 %v4475_v55, %v6020_v8 }
 0x67f   : > { %v5401_v60 = vadd.f32 %v6020_v8, %v2706_v0  ;;  %5545 = vtanh.f32 %v5398_v51 }
 0x680   : > { %5547 = vtanh.f32 %v5399_v61 }
 0x681   : > { %5549 = vtanh.f32 %v5401_v60 }
 0x682   : > { %5551 = vtanh.f32 %v5400_v3 }
 0x689   : > { %v5546_v1 = vpop.eup %5545 }
 0x68a   : > { %v5548_v2 = vpop.eup %5547 }
 0x68b   : > { %v5550_v5 = vpop.eup %5549  ;;  %4530 = vmatprep.mubr.f32.mxu0 %v5548_v2 }
 0x68c   : > { %v5552_v9 = vpop.eup %5551  ;;  %4565 = vmatprep.mubr.f32.mxu1 %v5550_v5  ;;  %4531 = vmatmul.mubr.f32.vlgmr.msra.gmra.mrb[14].mxu0 %v5546_v1 }
 0x68d   : > { %4566 = vmatmul.mubr.f32.vlgmr.msra.gmra.mrb[14].mxu1 %v5552_v9  ;;  %5313 = vmatpush3.bf16.msra.mxu0 %v5310_v43 }
 0x68e   : > { %5345 = vmatpush3.bf16.msra.mxu1 %v5310_v43  ;;  %5315 = vmatprep.subr.bf16.mxu0 %v5314_v4 }
 0x68f   : > { %5347 = vmatprep.subr.bf16.mxu1 %v5314_v4 }
 0x691   : > { %5317 = vmatpush3.bf16.msra.mxu0 %v5314_v4 }
 0x692   : > { %5349 = vmatpush3.bf16.msra.mxu1 %v5314_v4  ;;  %5319 = vmatprep.subr.bf16.mxu0 %v5318_v10 }
 0x693   : > { %5351 = vmatprep.subr.bf16.mxu1 %v5318_v10 }
 0x695   : > { %5321 = vmatpush3.bf16.msra.mxu0 %v5318_v10 }
 0x696   : > { %5353 = vmatpush3.bf16.msra.mxu1 %v5318_v10  ;;  %5323 = vmatprep.subr.bf16.mxu0 %v5322_v13 }
 0x697   : > { %5355 = vmatprep.subr.bf16.mxu1 %v5322_v13 }
 0x699   : > { %5325 = vmatpush3.bf16.msra.mxu0 %v5322_v13 }
 0x69a   : > { %5357 = vmatpush3.bf16.msra.mxu1 %v5322_v13  ;;  %5327 = vmatprep.subr.bf16.mxu0 %v5326_v16 }
 0x69b   : > { %5359 = vmatprep.subr.bf16.mxu1 %v5326_v16 }
 0x69d   : > { %5329 = vmatpush3.bf16.msra.mxu0 %v5326_v16 }
 0x69e   : > { %5361 = vmatpush3.bf16.msra.mxu1 %v5326_v16  ;;  %5331 = vmatprep.subr.bf16.mxu0 %v5330_v19 }
 0x69f   : > { %5363 = vmatprep.subr.bf16.mxu1 %v5330_v19 }
 0x6a1   : > { %5333 = vmatpush3.bf16.msra.mxu0 %v5330_v19 }
 0x6a2   : > { %5365 = vmatpush3.bf16.msra.mxu1 %v5330_v19  ;;  %5335 = vmatprep.subr.bf16.mxu0 %v5334_v23 }
 0x6a3   : > { %5367 = vmatprep.subr.bf16.mxu1 %v5334_v23 }
 0x6a5   : > { %5337 = vmatpush3.bf16.msra.mxu0 %v5334_v23 }
 0x6a6   : > { %5369 = vmatpush3.bf16.msra.mxu1 %v5334_v23  ;;  %5339 = vmatprep.subr.bf16.mxu0 %v5338_v25 }
 0x6a7   : > { %5371 = vmatprep.subr.bf16.mxu1 %v5338_v25 }
 0x6a9   : > { %5341 = vmatpush3.bf16.msra.mxu0 %v5338_v25 }
 0x6aa   : > { %5373 = vmatpush3.bf16.msra.mxu1 %v5338_v25 }
 0x75f   : > { %v4532_v26 = vpop.f32.mrb[14].mxu0 }
 0x760   : > { %v5402_v27 = vadd.f32 %v4532_v26, %v6020_v8  ;;  %v4567_v28 = vpop.f32.mrb[14].mxu1  ;;  %v2952_v29 = vpop.f32.mrb[15].mxu0 }
 0x761   : > { %v5403_v30 = vadd.f32 %v6020_v8, %v2952_v29  ;;  %v3027_v31 = vpop.f32.mrb[15].mxu1  ;;  %v5404_v32 = vadd.f32 %v4567_v28, %v6020_v8 }
 0x762   : > { %v5405_v33 = vadd.f32 %v6020_v8, %v3027_v31  ;;  %5553 = vtanh.f32 %v5402_v27 }
 0x763   : > { %5555 = vtanh.f32 %v5403_v30 }
 0x764   : > { %5557 = vtanh.f32 %v5405_v33 }
 0x765   : > { %5559 = vtanh.f32 %v5404_v32 }
 0x76c   : > { %v5554_v34 = vpop.eup %5553 }
 0x76d   : > { %v5556_v36 = vpop.eup %5555 }
 0x76e   : > { %v5558_v39 = vpop.eup %5557  ;;  %4600 = vmatprep.mubr.f32.mxu0 %v5556_v36 }
 0x76f   : > { %v5560_v40 = vpop.eup %5559  ;;  %4635 = vmatprep.mubr.f32.mxu1 %v5558_v39  ;;  %4601 = vmatmul.mubr.f32.vlgmr.msra.gmra.mrb[16].mxu0 %v5554_v34 }
 0x770   : > { %4636 = vmatmul.mubr.f32.vlgmr.msra.gmra.mrb[16].mxu1 %v5560_v40 }
 0x842   : > { %v4602_v8 = vpop.f32.mrb[16].mxu0 }
 0x843   : > { %v3142_v42 = vadd.f32 %v4602_v8, %v3404_v41  ;;  %v4637_v44 = vpop.f32.mrb[16].mxu1  ;;  %v3136_v45 = vpop.f32.mrb[17].mxu0 }
 0x844   : > { %v3219_v46 = vadd.f32 %v4637_v44, %v3404_v41  ;;  %v3137_v47 = vadd.f32 %v3404_v41, %v3136_v45  ;;  %v3213_v49 = vpop.f32.mrb[17].mxu1 }
 0x845   : > { %3146 = vst [vmem:[%s425_s27 + $0x8] sm:$0xff] %v3142_v42  ;;  %v3214_v50 = vadd.f32 %v3404_v41, %v3213_v49 }
 0x846   : > { %3223 = vst [vmem:[%s425_s27 + $0x18] sm:$0xff] %v3219_v46  ;;  %3145 = vst [vmem:[%s425_s27] sm:$0xff] %v3137_v47 }
 0x847   : > { %3222 = vst [vmem:[%s425_s27 + $0x10] sm:$0xff] %v3214_v50 }
 0x848   : > { %5574 = shalt.err (!%p5571_p7)
}
 0x849   : > { %s5575_s17 = scalar_lea.hbm %s6446_s12, 512  ;;  %s5579_s27 = scalar_lea.hbm %s6501_s6, 1024 }
 0x84a   : > { %p5576_p8 = scmp.ne.s32.totalorder %s6446_s12, %s5575_s17  ;;  %p5580_p13 = scmp.lt.u32.totalorder %s6446_s12, %s6501_s6 }
 0x84b   : > { %p5581_p0 = scmp.lt.u32.totalorder %s5579_s27, %s5575_s17  ;;  %p5583_p2 = scmp.lt.u32.totalorder %s5575_s17, %s6446_s12 }
 0x84c   : > { %p5577_p11 = pnand %p5576_p8, %p5720_p5 }
 0x84d   : > { %p5582_p1 = por %p5581_p0, %p5580_p13 }
 0x84e   : > { %p5578_p12 = pneg %p5577_p11 }
 0x84f   : > { %p5584_p3 = por %p5583_p2, %p5582_p1 }
 0x851   : > { %p5585_p4 = pnand %p5584_p3, %p5578_p12 }
 0x853   : > { %5588 = shalt.err (!%p5585_p4)
}
 0x854   : > { %s5644_s18 = smov 128   ;;  %s5645_s13 = smov 8  }
 0x855   : > { %5438 = dma.vmem_to_hbm [thread:$0]  (%p5720_p5), %s6441_s28, 512, %s6446_s12, %s3225_s24, %s5644_s18, %s5644_s18, %s5645_s13  }
 0x856 PF: > { %s3253_s14 = sand.u32 1, %s5619_s21   ;;  %p5441_p6 = pnand %p3320_p10, %p5731_p9 }
 0x857   : > { %s3254_s15 = scalar_lea.sflag [#allocation5], %s3253_s14 }
 0x858   : > { %5614 = dma.done.wait (!%p5441_p6), %s3254_s15, 512  }
 0x859   : > { %5616 = vsyncadd (!%p5441_p6), %s3254_s15, 4294966784  ;;  %s19_s26 = sadd.s32 1, %s5639_s26   ;;  %s6506_s21 = smov %s5623_s22 }
 0x85a   : > { %p16_p7 = scmp.ge.s32.totalorder %s19_s26, 4   ;;  %s6507_s22 = smov %s5627_s23 }
 0x85b   : > { %s6508_s23 = smov %s5729_s9  ;;  %s6509_s24 = smov %s5635_s25 }
 0x85c   : > { %s6510_s25 = smov %s6512_s29  ;;  %18 = sbr.rel (!%p16_p7) target bundleno = 4 (0x4), region = 137 }
 0x863   :  { %3259 = vsyncpa [#allocation5], 1 }
 0x864   :  { %3261 = vsyncpa [#allocation5 + $0x1], 1 }

</bundles_post_ra>
